<compile_context>
chip_gen: v7x
topology: tpu7x:2x2x1
jax: 0.10.0
libtpu: 0.0.40
codegen_flags: <defaults>
</compile_context>

<pallas_src>
import math

import jax
import jax.numpy as jnp
from jax import lax
from jax.experimental import pallas as pl
from jax.experimental.pallas import tpu as pltpu


_C0 = (((0,), (0,)), ((), ()))   # contract dim 0 of both operands (A^T @ B)
_MK = (((1,), (0,)), ((), ()))   # natural (M, K) @ (K, N)


def _make_kernel(b_blk, tq, nq):
    """Builds the kernel for a fixed (b_blk, tq, nq) configuration."""

    if nq == 1:
        # Single q-tile: no scratch; support^T computed inline per batch.
        def kernel(xk_ref, w_ref, o_ref):
            w = w_ref[...]                                        # (C_in, C_out) bf16

            def body(b, carry):
                xk_b = xk_ref[b]                                  # (C_in, N) bf16
                sup_t = lax.dot_general(
                    w, xk_b, _C0,
                    preferred_element_type=jnp.float32
                ).astype(jnp.bfloat16)                            # (C_out, N)
                logits_t = lax.dot_general(
                    xk_b, xk_b, _C0,
                    preferred_element_type=jnp.float32)           # (N, N) f32
                m = jnp.max(logits_t, axis=0, keepdims=True)
                e = jnp.exp(logits_t - m)
                denom = jnp.sum(e, axis=0, keepdims=True)
                adj_t = (e * pl.reciprocal(denom, approx=True)
                         ).astype(jnp.bfloat16)                   # (N, N)
                out_t = lax.dot_general(
                    sup_t, adj_t, _MK,
                    preferred_element_type=jnp.float32)           # (C_out, N)
                o_ref[b] = out_t.astype(o_ref.dtype)
                return carry

            lax.fori_loop(0, b_blk, body, 0)

        return kernel

    def kernel(xk_ref, w_ref, o_ref, sup_ref):
        qi = pl.program_id(1)

        # support^T is q-invariant: compute once per batch block at qi == 0
        # and reuse it for every q-tile (scratch persists along the
        # "arbitrary" q axis).
        @pl.when(qi == 0)
        def _():
            w = w_ref[...]

            def init(b, carry):
                sup_ref[b] = lax.dot_general(
                    w, xk_ref[b], _C0,
                    preferred_element_type=jnp.float32
                ).astype(jnp.bfloat16)                            # (C_out, N)
                return carry

            lax.fori_loop(0, b_blk, init, 0)

        q_start = pl.multiple_of(qi * tq, 128)

        def body(b, carry):
            xk_b_view = xk_ref.at[b]                              # (C_in, N) view
            xk_b = xk_b_view[...]                                 # (C_in, N) bf16
            xq_b = xk_b_view[:, pl.ds(q_start, tq)]               # (C_in, Tq) bf16
            logits_t = lax.dot_general(
                xk_b, xq_b, _C0,
                preferred_element_type=jnp.float32)               # (N, Tq) f32
            m = jnp.max(logits_t, axis=0, keepdims=True)
            e = jnp.exp(logits_t - m)
            denom = jnp.sum(e, axis=0, keepdims=True)
            adj_t = (e * pl.reciprocal(denom, approx=True)
                     ).astype(jnp.bfloat16)                       # (N, Tq)
            out_t = lax.dot_general(
                sup_ref[b], adj_t, _MK,
                preferred_element_type=jnp.float32)               # (C_out, Tq)
            o_ref[b] = out_t.astype(o_ref.dtype)
            return carry

        lax.fori_loop(0, b_blk, body, 0)

    return kernel


def _vmem_bytes(b_blk, tq, c_in, c_out, n):
    """Rough VMEM working-set estimate for a (b_blk, tq) configuration."""
    xk = 2 * b_blk * c_in * n * 2           # double-buffered bf16 keys block
    w = 2 * c_in * c_out * 2                # double-buffered bf16 weight
    out = 2 * b_blk * c_out * tq * 4        # double-buffered f32 output block
    sup = (b_blk * c_out * n * 2) if tq != n else 0   # support^T scratch
    tmp = n * tq * (4 + 4 + 2)              # logits_T f32 + exp f32 + adj_T bf16
    tmp += c_out * max(n, tq) * 4           # out_t / inline support temporaries
    return xk + w + out + sup + tmp


def graph_conv_net(x, weight, *, b_blk=None, tq=None):
    """x: (B, C_in, N) f32, weight: (C_in, C_out) f32 -> (B, C_out, N) f32."""
    B, C_in, N = x.shape
    C_out = weight.shape[1]

    # Per-generation VMEM budget (v5e/v6e: 128 MiB, v7x: 64 MiB physical).
    try:
        vmem_cap = int(pltpu.get_tpu_info().vmem_capacity_bytes)
    except Exception:
        vmem_cap = 64 * 1024 * 1024
    vmem_limit = min(int(vmem_cap * 0.8), 112 * 1024 * 1024)

    # Query-row tile: largest tile fitting the budget at b_blk=1 (bigger tiles
    # -> fewer ~0.35us pipeline steps; v5e/v6e naturally pick bigger than v7x).
    if tq is None:
        cands = [N] + [c for c in (2048, 1024, 512, 256, 128)
                       if c < N and N % c == 0]
        tq = cands[-1]
        for c in cands:
            if _vmem_bytes(1, c, C_in, C_out, N) <= vmem_limit:
                tq = c
                break
    assert N % tq == 0, (N, tq)
    assert tq == N or tq % 128 == 0, tq
    nq = N // tq

    # Batch folding: amortize per-step pipeline overhead, capped at 4 so live
    # ranges / VMEM stay bounded; prefer >= 2 batch blocks on the "parallel"
    # axis so both v7x TensorCores get work.
    if b_blk is None:
        divisors = [d for d in (4, 3, 2, 1) if B % d == 0]
        fitting = [d for d in divisors
                   if _vmem_bytes(d, tq, C_in, C_out, N) <= vmem_limit] or [1]
        pref = [d for d in fitting if B // d >= 2] or fitting
        b_blk = pref[0]
    assert B % b_blk == 0, (B, b_blk)
    nb = B // b_blk

    # bf16 cast once, outside the kernel (halves x HBM bytes; no in-kernel
    # repack passes). f32 accumulation happens inside the kernel.
    x_bf = x.astype(jnp.bfloat16)
    w_bf = weight.astype(jnp.bfloat16)

    scratch_shapes = []
    if nq > 1:
        scratch_shapes = [pltpu.VMEM((b_blk, C_out, N), jnp.bfloat16)]

    cost = pl.CostEstimate(
        flops=2 * B * N * C_in * (N + C_out) + 2 * B * N * N * C_out,
        transcendentals=B * N * N,
        bytes_accessed=B * C_in * N * 2 + C_in * C_out * 2 + B * C_out * N * 4,
    )

    return pl.pallas_call(
        _make_kernel(b_blk, tq, nq),
        out_shape=jax.ShapeDtypeStruct((B, C_out, N), jnp.float32),
        grid_spec=pltpu.PrefetchScalarGridSpec(
            num_scalar_prefetch=0,
            grid=(nb, nq),
            in_specs=[
                # Full-N keys block; index_map constant along the q axis ->
                # DMA'd once per batch block (q-tile sliced from it in-kernel).
                pl.BlockSpec((b_blk, C_in, N), lambda bi, qi: (bi, 0, 0)),
                # Weight, shared by every step.
                pl.BlockSpec((C_in, C_out), lambda bi, qi: (0, 0)),
            ],
            out_specs=pl.BlockSpec((b_blk, C_out, tq),
                                   lambda bi, qi: (bi, 0, qi)),
            scratch_shapes=scratch_shapes,
        ),
        compiler_params=pltpu.CompilerParams(
            # Batch-block axis parallel (megacore); q axis carries the
            # support^T scratch -> arbitrary.
            dimension_semantics=("parallel", "arbitrary"),
            vmem_limit_bytes=vmem_limit,
        ),
        cost_estimate=cost,
    )(x_bf, w_bf)


def reference(x, weight):
    hi = jax.lax.Precision.HIGHEST
    x_t = jnp.transpose(x, (0, 2, 1))
    support = jnp.einsum("bnc,co->bno", x_t, weight, precision=hi)
    adj = jax.nn.softmax(
        jnp.einsum("bnc,bcm->bnm", x_t, x, precision=hi), axis=2)
    out = jnp.einsum("bnm,bmo->bno", adj, support, precision=hi)
    return jnp.transpose(out, (0, 2, 1))


if __name__ == "__main__":
    key = jax.random.PRNGKey(0)
    k_x, k_w = jax.random.split(key)

    # Small shapes; second call forces q-tiling (nq=2) to exercise the
    # scratch-cached support^T + in-kernel q-slice path.
    B, C_in, C_out, N = 4, 16, 32, 256

    # Deterministic parameter init mirroring reset_parameters():
    # weight ~ U(-stdv, stdv), stdv = 1/sqrt(out_features). bias=False.
    stdv = 1.0 / math.sqrt(C_out)
    weight = jax.random.uniform(
        k_w, (C_in, C_out), dtype=jnp.float32, minval=-stdv, maxval=stdv)
    x = jax.random.normal(k_x, (B, C_in, N), dtype=jnp.float32)

    ref = reference(x, weight)

    # 1) Default config: tq = N (single q-tile, no scratch), b_blk = 2.
    out_a = jax.block_until_ready(graph_conv_net(x, weight))
    # 2) Forced tiling: tq = 128 -> nq = 2 q-tiles per batch block.
    out_b = jax.block_until_ready(graph_conv_net(x, weight, b_blk=2, tq=128))

    for out in (out_a, out_b):
        assert out.shape == (B, C_out, N)
        max_err = jnp.max(jnp.abs(out - ref))
        # bf16 MXU operands + approx reciprocal -> looser tolerance than f32.
        assert jnp.allclose(out, ref, atol=5e-2, rtol=5e-2), \
            f"max abs err {max_err}"
    print("KERNEL_OK")
</pallas_src>

<mosaic_0001>
module attributes {stable_mosaic.version = 11 : i64} {
  func.func @kernel(%arg0: i32, %arg1: i32, %arg2: memref<2x16x256xbf16, #tpu.memory_space<vmem>>, %arg3: memref<16x32xbf16, #tpu.memory_space<vmem>>, %arg4: memref<2x32x256xf32, #tpu.memory_space<vmem>>) attributes {dimension_semantics = [#tpu.dimension_semantics<parallel>, #tpu.dimension_semantics<arbitrary>], iteration_bounds = array<i64: 2, 1>, scalar_prefetch = 0 : i64, scratch_operands = 0 : i64, tpu.core_type = #tpu.core_type<tc>, window_params = [{transform_indices = @transform_0, window_bounds = array<i64: 2, 16, 256>}, {pipeline_mode = #tpu.pipeline_mode<synchronous>, transform_indices = @transform_1, window_bounds = array<i64: 16, 32>}, {transform_indices = @transform_2, window_bounds = array<i64: 2, 32, 256>}]} {
    %c0 = arith.constant 0 : index
    %c0_0 = arith.constant 0 : index
    %0 = vector.load %arg3[%c0, %c0_0] : memref<16x32xbf16, #tpu.memory_space<vmem>>, vector<16x32xbf16>
    %c0_i32 = arith.constant 0 : i32
    %c2_i32 = arith.constant 2 : i32
    %1 = arith.addi %c0_i32, %c2_i32 : i32
    %c1_i32 = arith.constant 1 : i32
    scf.for %arg5 = %c0_i32 to %1 step %c1_i32  : i32 {
      %2 = arith.index_cast %arg5 : i32 to index
      %c0_2 = arith.constant 0 : index
      %c0_3 = arith.constant 0 : index
      %3 = vector.load %arg2[%2, %c0_2, %c0_3] : memref<2x16x256xbf16, #tpu.memory_space<vmem>>, vector<1x16x256xbf16>
      %4 = vector.shape_cast %3 : vector<1x16x256xbf16> to vector<16x256xbf16>
      %cst = arith.constant dense<0.000000e+00> : vector<32x256xf32>
      %5 = tpu.matmul %0, %4, %cst {dimension_numbers = #tpu.dot_dimension_numbers<[0], [0], [1], [1], [0, 1, 1, 1], [], []>} : vector<16x32xbf16>, vector<16x256xbf16>, vector<32x256xf32> -> vector<32x256xf32>
      %6 = arith.truncf %5 : vector<32x256xf32> to vector<32x256xbf16>
      %cst_4 = arith.constant dense<0.000000e+00> : vector<256x256xf32>
      %7 = tpu.matmul %4, %4, %cst_4 {dimension_numbers = #tpu.dot_dimension_numbers<[0], [0], [1], [1], [0, 1, 1, 1], [], []>} : vector<16x256xbf16>, vector<16x256xbf16>, vector<256x256xf32> -> vector<256x256xf32>
      %cst_5 = arith.constant dense<0xFF800000> : vector<256xf32>
      %8 = vector.multi_reduction <maximumf>, %7, %cst_5 [0] : vector<256x256xf32> to vector<256xf32>
      %9 = vector.shape_cast %8 : vector<256xf32> to vector<1x256xf32>
      %10 = vector.broadcast %9 : vector<1x256xf32> to vector<256x256xf32>
      %11 = arith.subf %7, %10 : vector<256x256xf32>
      %12 = math.exp %11 : vector<256x256xf32>
      %cst_6 = arith.constant dense<0.000000e+00> : vector<256xf32>
      %13 = vector.multi_reduction <add>, %12, %cst_6 [0] : vector<256x256xf32> to vector<256xf32>
      %14 = vector.shape_cast %13 : vector<256xf32> to vector<1x256xf32>
      %15 = tpu.reciprocal %14 {approx = true} : vector<1x256xf32> -> vector<1x256xf32>
      %16 = vector.broadcast %15 : vector<1x256xf32> to vector<256x256xf32>
      %17 = arith.mulf %12, %16 : vector<256x256xf32>
      %18 = arith.truncf %17 : vector<256x256xf32> to vector<256x256xbf16>
      %cst_7 = arith.constant dense<0.000000e+00> : vector<32x256xf32>
      %19 = tpu.matmul %6, %18, %cst_7 {dimension_numbers = #tpu.dot_dimension_numbers<[1], [0], [0], [1], [0, 0, 1, 1], [], []>} : vector<32x256xbf16>, vector<256x256xbf16>, vector<32x256xf32> -> vector<32x256xf32>
      %20 = arith.index_cast %arg5 : i32 to index
      %c0_8 = arith.constant 0 : index
      %c0_9 = arith.constant 0 : index
      %21 = vector.load %arg4[%20, %c0_8, %c0_9] : memref<2x32x256xf32, #tpu.memory_space<vmem>>, vector<1x32x256xf32>
      %22 = vector.shape_cast %21 : vector<1x32x256xf32> to vector<32x256xf32>
      %23 = vector.shape_cast %19 : vector<32x256xf32> to vector<1x32x256xf32>
      tpu.vector_store %arg4[%20, %c0_8, %c0_9], %23 {strides = array<i32>} : memref<2x32x256xf32, #tpu.memory_space<vmem>>, vector<1x32x256xf32>,
    }
    %c2_i32_1 = arith.constant 2 : i32
    return
  }
  func.func @transform_0(%arg0: i32, %arg1: i32) -> (i32, i32, i32) {
    %c0_i32 = arith.constant 0 : i32
    %c0_i32_0 = arith.constant 0 : i32
    %c0_i32_1 = arith.constant 0 : i32
    return %arg0, %c0_i32, %c0_i32_0 : i32, i32, i32
  }
  func.func @transform_1(%arg0: i32, %arg1: i32) -> (i32, i32) {
    %c0_i32 = arith.constant 0 : i32
    %c0_i32_0 = arith.constant 0 : i32
    %c0_i32_1 = arith.constant 0 : i32
    return %c0_i32, %c0_i32_0 : i32, i32
  }
  func.func @transform_2(%arg0: i32, %arg1: i32) -> (i32, i32, i32) {
    %c0_i32 = arith.constant 0 : i32
    %c0_i32_0 = arith.constant 0 : i32
    return %arg0, %c0_i32, %arg1 : i32, i32, i32
  }
}

</mosaic_0001>

<bundles_post_ra>
// kernel: tpu_custom_call.1
= control target key start
LH: loop header
LB: loop body
LE: loop exit
PB: predicated region body
PF: predicated region fallthrough
CT: control target
= control target key end

     0   :  { %7 = vsyncpa [#allocation3], 0  ;;  %s2849_s0 = inlined_call_operand.hbm [shape: bf16[4,16,256], index: 0, kind: input, shape index: {}]   ;;  %s2850_s1 = inlined_call_operand.hbm [shape: bf16[16,32], index: 1, kind: input, shape index: {}]   ;;  %s2851_s2 = inlined_call_operand.hbm [shape: f32[4,32,256], index: 2, kind: output, shape index: {}]  }
   0x1   :  { %9 = vsyncpa [#allocation3 + $0x1], 0 }
   0x2   :  { %10 = vsyncpa [#allocation6], 0 }
   0x3   :  { %11 = vsyncpa [#allocation4], 0 }
   0x4   :  { %13 = vsyncpa [#allocation4 + $0x1], 0  ;;  %s1652_s9 = smov 0   ;;  %s1654_s10 = smov 0  }
   0x5   :  { %s1656_s11 = smov 0   ;;  %s1658_s12 = smov 0  }
   0x6   :  { %s1660_s13 = smov 0   ;;  %s1662_s14 = smov 0  }
   0x7 LB: > { %s1200_s15 = sadd.s32 4294967295, %s1621_s14   ;;  %s1201_s16 = sadd.s32 4294967294, %s1621_s14   ;;  %s1621_s14 = sphi %s1662_s14, %s19_s14   ;;  %s1617_s13 = sphi %s1660_s13, %s3094_s13   ;;  %s1613_s12 = sphi %s1658_s12, %s3093_s12   ;;  %s1609_s11 = sphi %s1656_s11, %s3092_s11   ;;  %s1605_s10 = sphi %s1654_s10, %s3091_s10   ;;  %s1601_s9 = sphi %s1652_s9, %s3090_s9  }
   0x8   : > { %p51_p0 = scmp.ne.s32.totalorder %s1605_s10, %s1601_s9  ;;  %p1686_p1 = scmp.eq.s32.totalorder %s1200_s15, 0 }
   0x9   : > { %p1690_p2 = scmp.eq.s32.totalorder %s1200_s15, 1  ;;  %p104_p3 = scmp.eq.s32.totalorder %s1201_s16, 1 }
   0xa   : > { %s2919_s17 = scalar_select %p1686_p1, 1, 0 }
   0xb   : > { %s2920_s18 = scalar_select %p1690_p2, 1, 0 }
   0xc   : > { %p1696_p4 = por %p1686_p1, %p51_p0  ;;  %p1202_p5 = scmp.ge.s32.totalorder %s1621_s14, 1 }
   0xd   : > { %p1701_p6 = por %p104_p3, %p51_p0  ;;  %p111_p7 = scmp.lt.s32.totalorder %s1621_s14, 3 }
   0xe   : > { %s2921_s19 = scalar_select %p1696_p4, 1, 0 }
   0xf   : > { %s2922_s20 = scalar_select %p1701_p6, 1, 0 }
  0x10   : > { %p1706_p8 = pnand %p1202_p5, %p111_p7  ;;  %s1627_s22 = smov [#allocation5]  }
  0x11   : > { %s123_s23 = sshll.u32 %s1627_s22, 4  ;;  %s31_s25 = sadd.s32 1, %s1617_s13  ;;  %s124_s23 = int_to_ptr.vmem [resolvable:$true] %s123_s23 }
  0x12   : > { %s2923_s21 = scalar_select %p1706_p8, 1, 0 }
  0x13   : > { %p1258_p9 = pneg %p1706_p8  ;;  %s1473_s28 = scalar_lea.hbm %s2850_s1, 128 }
  0x14   : > { %p1474_p12 = scmp.ne.s32.totalorder %s2850_s1, %s1473_s28  ;;  %p1480_p5 = scmp.lt.u32.totalorder %s1473_s28, %s2850_s1 }
  0x15   : > { %p1715_p11 = pnand %p1258_p9, %p1686_p1 }
  0x17   : > { %p1475_p13 = pneg %p1715_p11 }
  0x19   : > { %p1476_p0 = pnand %p1475_p13, %p1474_p12 }
  0x1b   : > { %p1477_p3 = pneg %p1476_p0 }
  0x1d   : > { %p1482_p7 = pnand %p1480_p5, %p1477_p3 }
  0x1f   : > { %1485 = shalt.err (!%p1482_p7)
}
  0x20   : > { %s1486_s5 = scalar_lea.vmem %s124_s23, 128  ;;  %p1494_p1 = scmp.lt.s32.totalorder %s124_s23, %s124_s23 }
  0x21   : > { %p1487_p9 = scmp.ne.s32.totalorder %s124_s23, %s1486_s5  ;;  %p1495_p4 = scmp.lt.s32.totalorder %s1486_s5, %s1486_s5 }
  0x23   : > { %p1489_p10 = pnand %p1487_p9, %p1475_p13  ;;  %p1496_p8 = por %p1495_p4, %p1494_p1 }
  0x25   : > { %p1490_p6 = pneg %p1489_p10 }
  0x27   : > { %p1497_p2 = pnand %p1496_p8, %p1490_p6 }
  0x29   : > { %1500 = shalt.err (!%p1497_p2)
}
  0x2a   : > { %s1628_s6 = smov 64   ;;  %s1629_s7 = smov 4  }
  0x2b   : > { %1261 = dma.hbm_to_vmem [thread:$0]  (!%p1715_p11), %s2850_s1, 128, %s124_s23, [#allocation6], %s1628_s6, %s1628_s6, %s1629_s7  }
  0x2c   : > { %p33_p1 = scmp.ge.s32.totalorder %s31_s25, 2  ;;  %s38_s16 = sadd.s32 1, %s1609_s11 }
  0x2d   : > { %p45_p2 = scmp.ne.s32.totalorder %s1609_s11, %s1605_s10  ;;  %p46_p4 = scmp.eq.s32.totalorder %s1621_s14, 0 }
  0x2e   : > { %s3096_s25 = smov (%p33_p1, %s31_s25), 0  ;;  %p2926_p8 = scmp.ne.s32.totalorder %s2920_s18, 0 }
  0x2f   : > { %p1742_p6 = por %p46_p4, %p45_p2  ;;  %s35_s24 = ssub.s32 %s1617_s13, %s3096_s25 }
  0x30   : > { %p1748_p10 = por %p2926_p8, %p45_p2  ;;  %p1271_p12 = scmp.lt.s32.totalorder %s1621_s14, 2 }
  0x31   : > { %p36_p11 = scmp.eq.s32.totalorder %s35_s24, 0  ;;  %s137_s23 = sand.u32 1, %s1609_s11  }
  0x32   : > { %s1205_s27 = sshll.u32 %s137_s23, 5  ;;  %s1245_s29 = sshll.u32 %s1617_s13, 9 }
  0x33   : > { %s1757_s28 = scalar_select %p36_p11, %s1609_s11, %s38_s16  }
  0x34   : > { %s1763_s4 = scalar_lea.hbm %s2849_s0, %s1245_s29  ;;  %s141_s18 = scalar_lea.vmem [#allocation2], %s1205_s27 }
  0x35   : > { %s149_s5 = sshll.u32 %s141_s18, 4  ;;  %p1769_p13 = pnand %p1271_p12, %p1742_p6  ;;  %s1765_s5 = int_to_ptr.vmem [resolvable:$true] %s149_s5 }
  0x36   : > { %s1773_s7 = scalar_lea.sflag [#allocation3], %s137_s23  ;;  %s1501_s8 = scalar_lea.hbm %s1763_s4, 512 }
  0x37   : > { %p1502_p0 = scmp.ne.s32.totalorder %s1763_s4, %s1501_s8  ;;  %p1503_p3 = pneg %p1769_p13 }
  0x38   : > { %s1506_s22 = scalar_lea.hbm %s2849_s0, 1024  ;;  %p1507_p9 = scmp.lt.u32.totalorder %s1763_s4, %s2849_s0 }
  0x39   : > { %p1504_p5 = pnand %p1503_p3, %p1502_p0  ;;  %p1508_p1 = scmp.lt.u32.totalorder %s1506_s22, %s1501_s8 }
  0x3a   : > { %p1510_p4 = scmp.lt.u32.totalorder %s1501_s8, %s1763_s4 }
  0x3b   : > { %p1505_p7 = pneg %p1504_p5  ;;  %p1509_p2 = por %p1508_p1, %p1507_p9 }
  0x3d   : > { %p1511_p6 = por %p1510_p4, %p1509_p2 }
  0x3f   : > { %p1512_p8 = pnand %p1511_p6, %p1505_p7 }
  0x41   : > { %1515 = shalt.err (!%p1512_p8)
}
  0x42   : > { %s1516_s23 = scalar_lea.vmem %s1765_s5, 512  ;;  %s1630_s29 = smov [#allocation2]  }
  0x43   : > { %p1517_p12 = scmp.ne.s32.totalorder %s1765_s5, %s1516_s23  ;;  %s1521_s30 = sshll.u32 %s1630_s29, 4  ;;  %s1522_s30 = int_to_ptr.vmem [resolvable:$false] %s1521_s30 }
  0x44   : > { %s1523_s3 = scalar_lea.vmem %s1522_s30, 1024  ;;  %p1524_p5 = scmp.lt.s32.totalorder %s1765_s5, %s1522_s30 }
  0x45   : > { %p1519_p11 = pnand %p1517_p12, %p1503_p3  ;;  %p1525_p9 = scmp.lt.s32.totalorder %s1523_s3, %s1516_s23 }
  0x47   : > { %p1520_p0 = pneg %p1519_p11  ;;  %p1526_p1 = por %p1525_p9, %p1524_p5 }
  0x49   : > { %p1527_p2 = pnand %p1526_p1, %p1520_p0 }
  0x4b   : > { %1530 = shalt.err (!%p1527_p2)
}
  0x4c   : > { %s1631_s18 = smov 128   ;;  %s1632_s8 = smov 8  }
  0x4d   : > { %1265 = dma.hbm_to_vmem [thread:$0]  (!%p1769_p13), %s1763_s4, 512, %s1765_s5, %s1773_s7, %s1631_s18, %s1631_s18, %s1632_s8  }
  0x4e   : > { %p2929_p3 = scmp.ne.s32.totalorder %s2923_s21, 0 }
  0x50   : > { %161 = sbr.rel (%p2929_p3) target bundleno = 991 (0x3df), region = 28 }
  0x57   : > { %s1804_s15 = sand.u32 1, %s1605_s10   ;;  %p2930_p7 = scmp.ne.s32.totalorder %s2921_s19, 0 }
  0x58   : > { %s1210_s16 = sshll.u32 %s1804_s15, 5  ;;  %s164_s22 = scalar_lea.sflag [#allocation3], %s1804_s15 }
  0x59   : > { %s1808_s24 = scalar_lea.vmem [#allocation2], %s1210_s16 }
  0x5a   : > { %1588 = dma.done.wait (%p2930_p7), %s164_s22, 512  }
  0x5b   : > { %1590 = vsyncadd (%p2930_p7), %s164_s22, 4294966784  ;;  %p2931_p13 = scmp.ne.s32.totalorder %s2919_s17, 0 }
  0x5d   : > { %1592 = dma.done.wait (%p2931_p13), [#allocation6], 128  }
  0x5e   : > { %1594 = vsyncadd (%p2931_p13), [#allocation6], 4294967168  ;;  %s1212_s21 = sshll.u32 %s1804_s15, 7  ;;  %v1819_v0 = vld [vmem:[#allocation5] sm:$0xf]  ;;  %s1825_s5 = smov 0  }
  0x5f   : > { %2932 = vst [vmem:[#allocation11_spill] sm:$0xff] %v1819_v0  ;;  %v1821_v1 = vld [vmem:[#allocation5 + $0x4] sm:$0xf]  ;;  %s1823_s4 = scalar_lea.vmem [#allocation7], %s1212_s21 }
  0x60   : > { %2933 = vst [vmem:[#allocation12_spill] sm:$0xff] %v1821_v1 }
  0x61 LB: >> { %v1633_v2 = vmov 0   ;;  %s1246_s17 = sshll.u32 %s1625_s5, 4  ;;  %vm241_vm0 = vcmask 130048   ;;  %s1247_s6 = sshll.u32 %s1625_s5, 6  ;;  %s1625_s5 = sphi %s1825_s5, %s203_s5  }
  0x62   : >> { %417 = vmatprep.mubr.bf16.mxu1 %v1633_v2  ;;  %280 = vmatprep.mubr.bf16.mxu0 %v1633_v2  ;;  %s206_s19 = scalar_lea.vmem %s1808_s24, %s1246_s17 [#allocation2]  ;;  %s1071_s7 = scalar_lea.vmem %s1823_s4, %s1247_s6 [#allocation7] }
  0x63   : >> { %v1338_v3 = vld [vmem:[%s206_s19] ss:$8 sps:$4 sm:$0xff]   ;;  %v1340_v4 = vld [vmem:[%s206_s19 + $0x4] ss:$8 sps:$4 sm:$0xff]   ;;  %s203_s5 = sadd.s32 1, %s1625_s5  }
  0x64   : >> { %305 = vxpose.xlu0.c.b16.start.end [1/1] (short) %v1338_v3, 128  ;;  %385 = vmatprep.subr.bf16.mxu1 %v1340_v4  ;;  %p200_p4 = scmp.ge.s32.totalorder %s203_s5, 2  }
  0x65   : >> { %248 = vmatprep.subr.bf16.mxu0 %v1340_v4  ;;  %386 = vmatpush1.bf16.msra.mxu1 %v1338_v3  ;;  %s1249_s27 = sshll.u32 (%p200_p4), %s1613_s12, 11  ;;  %s1097_s3 = sshll.u32 (%p200_p4), %s1823_s4, 4  ;;  %s2800_s3 = int_to_ptr.vmem [resolvable:$true] %s1097_s3 }
  0x66   : >> { %249 = vmatpush1.bf16.msra.mxu0 %v1338_v3  ;;  %v2935_v0 = vld [vmem:[#allocation11_spill] sm:$0xff]  ;;  %s2797_s30 = scalar_lea.hbm (%p200_p4), %s2851_s2, %s1249_s27  ;;  %s1081_s18 = scalar_lea.sflag (%p200_p4), [#allocation4], %s1804_s15 }
  0x67   : >> { %v2934_v1 = vld [vmem:[#allocation12_spill] sm:$0xff]  ;;  %s1531_s8 = scalar_lea.vmem (%p200_p4), %s2800_s3, 2048  ;;  %s1634_s16 = smov (%p200_p4), [#allocation7]  }
  0x68   : >> { %v1215_v5 = vcombine.low %v2935_v0, %v2934_v1  ;;  %p1532_p6 = scmp.ne.s32.totalorder (%p200_p4), %s2800_s3, %s1531_s8  ;;  %s1535_s22 = sshll.u32 (%p200_p4), %s1634_s16, 4  ;;  %s1536_s22 = int_to_ptr.vmem [resolvable:$false] %s1535_s22 }
  0x69   : > { %s1537_s12 = scalar_lea.vmem (%p200_p4), %s1536_s22, 4096  ;;  %p1538_p11 = scmp.lt.s32.totalorder (%p200_p4), %s2800_s3, %s1536_s22 }
  0x6a   : >> { %215 = vxpose.xlu1.c.b16.start.end [1/1] (short) (narrow) %v1215_v5, 32  ;;  %p1533_p8 = pnand (%p200_p4), %p1532_p6, %p1748_p10  ;;  %p1539_p0 = scmp.lt.s32.totalorder (%p200_p4), %s1537_s12, %s1531_s8 }
  0x6c   : > { %p1534_p12 = pneg (%p200_p4), %p1533_p8  ;;  %p1540_p5 = por (%p200_p4), %p1539_p0, %p1538_p11 }
  0x6e   : > { %p1541_p9 = pnand (%p200_p4), %p1540_p5, %p1534_p12 }
  0x81   : >> { %321 = vxpose.xlu0.c.b16.start.end [1/1] (short) %v1340_v4, 128 }
  0xca   : >> { %v313_v6 = vpop.trf.xlu0 }
  0xcb   : >> { %1220 = vmatmul.mubr.msk.bf16.vlgmr.msra.gmra.mrb[0].mxu1 %vm241_vm0, %v313_v6 }
  0xcc   : >> { %427 = vmatprep.mubr.bf16.mxu1 %v1633_v2 }
  0xce   : >> { %v314_v7 = vpop.trf.xlu0 }
  0xd0   : >> { %v223_v22 = vpop.trf.xlu1 }
  0xd1   : >> { %1218 = vmatmul.mubr.msk.bf16.vlgmr.msra.gmra.mrb[0].mxu0 %vm241_vm0, %v223_v22 }
  0xd2   : >> { %v315_v8 = vpop.trf.xlu0  ;;  %290 = vmatprep.mubr.bf16.mxu0 %v1633_v2 }
  0xd3   : >> { %1221 = vmatmul.mubr.msk.bf16.gmra.mrb[4].mxu1 %vm241_vm0, %v314_v7 }
  0xd4   : >> { %437 = vmatprep.mubr.bf16.mxu1 %v1633_v2  ;;  %v224_v23 = vpop.trf.xlu1 }
  0xd6   : >> { %v316_v9 = vpop.trf.xlu0 }
  0xd9   : >> { %1219 = vmatmul.mubr.msk.bf16.gmra.mrb[4].mxu0 %vm241_vm0, %v224_v23 }
  0xda   : >> { %v317_v10 = vpop.trf.xlu0 }
  0xdb   : >> { %1222 = vmatmul.mubr.msk.bf16.gmra.mrb[8].mxu1 %vm241_vm0, %v315_v8 }
  0xdc   : >> { %447 = vmatprep.mubr.bf16.mxu1 %v1633_v2 }
  0xde   : >> { %v318_v11 = vpop.trf.xlu0 }
  0xe2   : >> { %v319_v12 = vpop.trf.xlu0 }
  0xe3   : >> { %1223 = vmatmul.mubr.msk.bf16.gmra.mrb[12].mxu1 %vm241_vm0, %v316_v9 }
  0xe4   : >> { %457 = vmatprep.mubr.bf16.mxu1 %v1633_v2 }
  0xe6   : >> { %v320_v13 = vpop.trf.xlu0 }
  0xea   : >> { %v329_v14 = vpop.trf.xlu0 }
  0xeb   : >> { %1224 = vmatmul.mubr.msk.bf16.gmra.mrb[16].mxu1 %vm241_vm0, %v317_v10 }
  0xec   : >> { %467 = vmatprep.mubr.bf16.mxu1 %v1633_v2 }
  0xee   : >> { %v330_v15 = vpop.trf.xlu0 }
  0xf2   : >> { %v331_v16 = vpop.trf.xlu0 }
  0xf3   : >> { %1225 = vmatmul.mubr.msk.bf16.gmra.mrb[20].mxu1 %vm241_vm0, %v318_v11 }
  0xf4   : >> { %477 = vmatprep.mubr.bf16.mxu1 %v1633_v2 }
  0xf6   : >> { %v332_v17 = vpop.trf.xlu0 }
  0xfa   : >> { %v333_v18 = vpop.trf.xlu0 }
  0xfb   : >> { %1226 = vmatmul.mubr.msk.bf16.gmra.mrb[24].mxu1 %vm241_vm0, %v319_v12 }
  0xfc   : >> { %487 = vmatprep.mubr.bf16.mxu1 %v1633_v2 }
  0xfe   : >> { %v334_v19 = vpop.trf.xlu0 }
 0x102   : >> { %v335_v20 = vpop.trf.xlu0 }
 0x103   : >> { %1227 = vmatmul.mubr.msk.bf16.gmra.mrb[28].mxu1 %vm241_vm0, %v320_v13 }
 0x104   : >> { %497 = vmatprep.mubr.bf16.mxu1 %v1633_v2 }
 0x106   : >> { %v336_v21 = vpop.trf.xlu0 }
 0x10b   : >> { %1228 = vmatmul.mubr.msk.bf16.gmra.mrb[32].mxu1 %vm241_vm0, %v329_v14 }
 0x10c   : >> { %507 = vmatprep.mubr.bf16.mxu1 %v1633_v2 }
 0x113   : >> { %1229 = vmatmul.mubr.msk.bf16.gmra.mrb[36].mxu1 %vm241_vm0, %v330_v15 }
 0x114   : >> { %517 = vmatprep.mubr.bf16.mxu1 %v1633_v2 }
 0x11b   : >> { %1230 = vmatmul.mubr.msk.bf16.gmra.mrb[40].mxu1 %vm241_vm0, %v331_v16 }
 0x11c   : >> { %527 = vmatprep.mubr.bf16.mxu1 %v1633_v2 }
 0x123   : >> { %1231 = vmatmul.mubr.msk.bf16.gmra.mrb[44].mxu1 %vm241_vm0, %v332_v17 }
 0x124   : >> { %537 = vmatprep.mubr.bf16.mxu1 %v1633_v2 }
 0x12b   : >> { %1232 = vmatmul.mubr.msk.bf16.gmra.mrb[48].mxu1 %vm241_vm0, %v333_v18 }
 0x12c   : >> { %547 = vmatprep.mubr.bf16.mxu1 %v1633_v2 }
 0x133   : >> { %1233 = vmatmul.mubr.msk.bf16.gmra.mrb[52].mxu1 %vm241_vm0, %v334_v19 }
 0x134   : >> { %557 = vmatprep.mubr.bf16.mxu1 %v1633_v2 }
 0x13b   : >> { %1234 = vmatmul.mubr.msk.bf16.gmra.mrb[56].mxu1 %vm241_vm0, %v335_v20 }
 0x13c   : >> { %567 = vmatprep.mubr.bf16.mxu1 %v1633_v2 }
 0x143   : >> { %1235 = vmatmul.mubr.msk.bf16.gmra.mrb[60].mxu1 %vm241_vm0, %v336_v21 }
 0x19e   : >> { %v1870_v24 = vpop.f32.mrb[0].mxu1 }
 0x19f   : >> { %v1872_v25 = vpop.f32.mrb[1].mxu1 }
 0x1a0   : >> { %v1874_v26 = vpop.f32.mrb[2].mxu1 }
 0x1a1   : >> { %v1876_v27 = vpop.f32.mrb[3].mxu1 }
 0x1a6   : >> { %v1878_v28 = vpop.f32.mrb[4].mxu1 }
 0x1a7   : >> { %v578_v29 = vmax.f32 %v1870_v24, %v1878_v28  ;;  %v1882_v30 = vpop.f32.mrb[5].mxu1 }
 0x1a8   : >> { %v615_v31 = vmax.f32 %v1872_v25, %v1882_v30  ;;  %v1886_v32 = vpop.f32.mrb[6].mxu1 }
 0x1a9   : >> { %v579_v33 = vmax.f32 %v1874_v26, %v1886_v32  ;;  %v1890_v34 = vpop.f32.mrb[7].mxu1 }
 0x1aa   : >> { %v616_v35 = vmax.f32 %v1876_v27, %v1890_v34 }
 0x1ae   : >> { %v1894_v36 = vpop.f32.mrb[8].mxu1 }
 0x1af   : >> { %v580_v37 = vmax.f32 %v578_v29, %v1894_v36  ;;  %v1897_v38 = vpop.f32.mrb[9].mxu1 }
 0x1b0   : >> { %v617_v39 = vmax.f32 %v615_v31, %v1897_v38  ;;  %v1900_v40 = vpop.f32.mrb[10].mxu1 }
 0x1b1   : >> { %v581_v41 = vmax.f32 %v579_v33, %v1900_v40  ;;  %v1903_v42 = vpop.f32.mrb[11].mxu1 }
 0x1b2   : >> { %v618_v43 = vmax.f32 %v616_v35, %v1903_v42 }
 0x1b6   : >> { %v1906_v44 = vpop.f32.mrb[12].mxu1 }
 0x1b7   : >> { %v582_v45 = vmax.f32 %v580_v37, %v1906_v44  ;;  %v1909_v46 = vpop.f32.mrb[13].mxu1 }
 0x1b8   : >> { %v619_v47 = vmax.f32 %v617_v39, %v1909_v46  ;;  %v1912_v48 = vpop.f32.mrb[14].mxu1 }
 0x1b9   : >> { %v583_v49 = vmax.f32 %v581_v41, %v1912_v48  ;;  %v1915_v50 = vpop.f32.mrb[15].mxu1 }
 0x1ba   : >> { %v620_v51 = vmax.f32 %v618_v43, %v1915_v50 }
 0x1be   : >> { %v1918_v52 = vpop.f32.mrb[16].mxu1 }
 0x1bf   : >> { %v584_v53 = vmax.f32 %v582_v45, %v1918_v52  ;;  %v1921_v54 = vpop.f32.mrb[17].mxu1 }
 0x1c0   : >> { %v621_v55 = vmax.f32 %v619_v47, %v1921_v54  ;;  %v1924_v56 = vpop.f32.mrb[18].mxu1 }
 0x1c1   : >> { %v585_v57 = vmax.f32 %v583_v49, %v1924_v56  ;;  %v1927_v58 = vpop.f32.mrb[19].mxu1 }
 0x1c2   : >> { %v622_v59 = vmax.f32 %v620_v51, %v1927_v58 }
 0x1c6   : >> { %v1930_v60 = vpop.f32.mrb[20].mxu1 }
 0x1c7   : >> { %v586_v61 = vmax.f32 %v584_v53, %v1930_v60  ;;  %v1933_v62 = vpop.f32.mrb[21].mxu1 }
 0x1c8   : >> { %v623_v63 = vmax.f32 %v621_v55, %v1933_v62  ;;  %v1936_v2 = vpop.f32.mrb[22].mxu1 }
 0x1c9   : >> { %v587_v3 = vmax.f32 %v585_v57, %v1936_v2  ;;  %v1939_v4 = vpop.f32.mrb[23].mxu1 }
 0x1ca   : >> { %2936 = vst [vmem:[#allocation13_spill] sm:$0xff] %v1939_v4  ;;  %v624_v5 = vmax.f32 %v622_v59, %v1939_v4 }
 0x1ce   : >> { %v1942_v6 = vpop.f32.mrb[24].mxu1 }
 0x1cf   : >> { %v588_v7 = vmax.f32 %v586_v61, %v1942_v6  ;;  %v1945_v8 = vpop.f32.mrb[25].mxu1 }
 0x1d0   : >> { %2937 = vst [vmem:[#allocation14_spill] sm:$0xff] %v1945_v8  ;;  %v625_v9 = vmax.f32 %v623_v63, %v1945_v8  ;;  %v1948_v10 = vpop.f32.mrb[26].mxu1 }
 0x1d1   : >> { %v589_v11 = vmax.f32 %v587_v3, %v1948_v10  ;;  %v1951_v12 = vpop.f32.mrb[27].mxu1 }
 0x1d2   : >> { %2938 = vst [vmem:[#allocation15_spill] sm:$0xff] %v1951_v12  ;;  %v626_v13 = vmax.f32 %v624_v5, %v1951_v12 }
 0x1d6   : >> { %v1954_v14 = vpop.f32.mrb[28].mxu1 }
 0x1d7   : >> { %v590_v15 = vmax.f32 %v588_v7, %v1954_v14  ;;  %v1957_v16 = vpop.f32.mrb[29].mxu1 }
 0x1d8   : >> { %2939 = vst [vmem:[#allocation16_spill] sm:$0xff] %v1957_v16  ;;  %v627_v17 = vmax.f32 %v625_v9, %v1957_v16  ;;  %v1960_v18 = vpop.f32.mrb[30].mxu1 }
 0x1d9   : >> { %v591_v19 = vmax.f32 %v589_v11, %v1960_v18  ;;  %v1963_v20 = vpop.f32.mrb[31].mxu1 }
 0x1da   : >> { %2940 = vst [vmem:[#allocation17_spill] sm:$0xff] %v1963_v20  ;;  %v628_v21 = vmax.f32 %v626_v13, %v1963_v20 }
 0x1de   : >> { %v1966_v22 = vpop.f32.mrb[32].mxu1 }
 0x1df   : >> { %v592_v23 = vmax.f32 %v590_v15, %v1966_v22  ;;  %v1969_v29 = vpop.f32.mrb[33].mxu1 }
 0x1e0   : >> { %2941 = vst [vmem:[#allocation18_spill] sm:$0xff] %v1969_v29  ;;  %v629_v31 = vmax.f32 %v627_v17, %v1969_v29  ;;  %v1972_v33 = vpop.f32.mrb[34].mxu1 }
 0x1e1   : >> { %v593_v35 = vmax.f32 %v591_v19, %v1972_v33  ;;  %v1975_v37 = vpop.f32.mrb[35].mxu1 }
 0x1e2   : >> { %2942 = vst [vmem:[#allocation19_spill] sm:$0xff] %v1975_v37  ;;  %v630_v39 = vmax.f32 %v628_v21, %v1975_v37 }
 0x1e6   : >> { %v1978_v41 = vpop.f32.mrb[36].mxu1 }
 0x1e7   : >> { %v594_v43 = vmax.f32 %v592_v23, %v1978_v41  ;;  %v1981_v45 = vpop.f32.mrb[37].mxu1 }
 0x1e8   : >> { %2943 = vst [vmem:[#allocation20_spill] sm:$0xff] %v1981_v45  ;;  %v631_v47 = vmax.f32 %v629_v31, %v1981_v45  ;;  %v1984_v49 = vpop.f32.mrb[38].mxu1 }
 0x1e9   : >> { %v595_v51 = vmax.f32 %v593_v35, %v1984_v49  ;;  %v1987_v53 = vpop.f32.mrb[39].mxu1 }
 0x1ea   : >> { %2944 = vst [vmem:[#allocation21_spill] sm:$0xff] %v1987_v53  ;;  %v632_v55 = vmax.f32 %v630_v39, %v1987_v53 }
 0x1ee   : >> { %v1990_v57 = vpop.f32.mrb[40].mxu1 }
 0x1ef   : >> { %v596_v59 = vmax.f32 %v594_v43, %v1990_v57  ;;  %v1993_v61 = vpop.f32.mrb[41].mxu1 }
 0x1f0   : >> { %2945 = vst [vmem:[#allocation22_spill] sm:$0xff] %v1993_v61  ;;  %v633_v63 = vmax.f32 %v631_v47, %v1993_v61  ;;  %v1996_v3 = vpop.f32.mrb[42].mxu1 }
 0x1f1   : >> { %v597_v5 = vmax.f32 %v595_v51, %v1996_v3  ;;  %v1999_v7 = vpop.f32.mrb[43].mxu1 }
 0x1f2   : >> { %2946 = vst [vmem:[#allocation23_spill] sm:$0xff] %v1999_v7  ;;  %v634_v9 = vmax.f32 %v632_v55, %v1999_v7 }
 0x1f6   : >> { %v2002_v11 = vpop.f32.mrb[44].mxu1 }
 0x1f7   : >> { %v598_v13 = vmax.f32 %v596_v59, %v2002_v11  ;;  %v2005_v15 = vpop.f32.mrb[45].mxu1 }
 0x1f8   : >> { %2947 = vst [vmem:[#allocation24_spill] sm:$0xff] %v2005_v15  ;;  %v635_v17 = vmax.f32 %v633_v63, %v2005_v15  ;;  %v2008_v19 = vpop.f32.mrb[46].mxu1 }
 0x1f9   : >> { %v599_v21 = vmax.f32 %v597_v5, %v2008_v19  ;;  %v2011_v23 = vpop.f32.mrb[47].mxu1 }
 0x1fa   : >> { %2948 = vst [vmem:[#allocation25_spill] sm:$0xff] %v2011_v23  ;;  %v636_v31 = vmax.f32 %v634_v9, %v2011_v23 }
 0x1fe   : >> { %v2014_v35 = vpop.f32.mrb[48].mxu1 }
 0x1ff   : >> { %v600_v39 = vmax.f32 %v598_v13, %v2014_v35  ;;  %v2017_v43 = vpop.f32.mrb[49].mxu1 }
 0x200   : >> { %2949 = vst [vmem:[#allocation26_spill] sm:$0xff] %v2017_v43  ;;  %v637_v47 = vmax.f32 %v635_v17, %v2017_v43  ;;  %v2020_v51 = vpop.f32.mrb[50].mxu1 }
 0x201   : >> { %v601_v55 = vmax.f32 %v599_v21, %v2020_v51  ;;  %v2023_v59 = vpop.f32.mrb[51].mxu1 }
 0x202   : >> { %2950 = vst [vmem:[#allocation27_spill] sm:$0xff] %v2023_v59  ;;  %v638_v63 = vmax.f32 %v636_v31, %v2023_v59 }
 0x206   : >> { %v2026_v5 = vpop.f32.mrb[52].mxu1 }
 0x207   : >> { %v602_v9 = vmax.f32 %v600_v39, %v2026_v5  ;;  %v2029_v0 = vpop.f32.mrb[53].mxu1 }
 0x208   : >> { %2951 = vst [vmem:[#allocation28_spill] sm:$0xff] %v2029_v0  ;;  %v639_v13 = vmax.f32 %v637_v47, %v2029_v0  ;;  %v2032_v1 = vpop.f32.mrb[54].mxu1 }
 0x209   : >> { %v603_v17 = vmax.f32 %v601_v55, %v2032_v1  ;;  %v2035_v43 = vpop.f32.mrb[55].mxu1 }
 0x20a   : >> { %2952 = vst [vmem:[#allocation29_spill] sm:$0xff] %v2035_v43  ;;  %v640_v21 = vmax.f32 %v638_v63, %v2035_v43 }
 0x20e   : >> { %v2038_v23 = vpop.f32.mrb[56].mxu1 }
 0x20f   : >> { %v604_v31 = vmax.f32 %v602_v9, %v2038_v23  ;;  %v2041_v59 = vpop.f32.mrb[57].mxu1 }
 0x210   : >> { %2953 = vst [vmem:[#allocation30_spill] sm:$0xff] %v2041_v59  ;;  %v641_v39 = vmax.f32 %v639_v13, %v2041_v59  ;;  %v2044_v15 = vpop.f32.mrb[58].mxu1 }
 0x211   : >> { %v605_v47 = vmax.f32 %v603_v17, %v2044_v15  ;;  %v2047_v0 = vpop.f32.mrb[59].mxu1 }
 0x212   : >> { %2954 = vst [vmem:[#allocation31_spill] sm:$0xff] %v2047_v0  ;;  %v642_v55 = vmax.f32 %v640_v21, %v2047_v0 }
 0x216   : >> { %v2050_v7 = vpop.f32.mrb[60].mxu1 }
 0x217   : >> { %v606_v63 = vmax.f32 %v604_v31, %v2050_v7  ;;  %v2053_v43 = vpop.f32.mrb[61].mxu1 }
 0x218   : >> { %2955 = vst [vmem:[#allocation32_spill] sm:$0xff] %v2053_v43  ;;  %v643_v9 = vmax.f32 %v641_v39, %v2053_v43  ;;  %v2056_v61 = vpop.f32.mrb[62].mxu1 }
 0x219   : >> { %v607_v13 = vmax.f32 %v605_v47, %v2056_v61  ;;  %v2059_v59 = vpop.f32.mrb[63].mxu1 }
 0x21a   : >> { %2956 = vst [vmem:[#allocation33_spill] sm:$0xff] %v2059_v59  ;;  %v644_v17 = vmax.f32 %v642_v55, %v2059_v59 }
 0x21b   : >> { %v608_v53 = vmax.f32 %v606_v63, %v607_v13 }
 0x21c   : >> { %v645_v45 = vmax.f32 %v643_v9, %v644_v17 }
 0x21d   : >> { %v609_v37 = vrot.slane %v608_v53, 4 }
 0x21e   : >> { %v646_v21 = vrot.slane %v645_v45, 4 }
 0x21f   : >> { %v610_v0 = vmax.f32 %v608_v53, %v609_v37 }
 0x220   : >> { %v647_v29 = vmax.f32 %v645_v45, %v646_v21 }
 0x221   : >> { %v611_v20 = vrot.slane %v610_v0, 2 }
 0x222   : >> { %v648_v31 = vrot.slane %v647_v29, 2 }
 0x223   : >> { %v612_v16 = vmax.f32 %v610_v0, %v611_v20 }
 0x224   : >> { %v649_v12 = vmax.f32 %v647_v29, %v648_v31 }
 0x225   : >> { %v613_v8 = vrot.slane %v612_v16, 1 }
 0x226   : >> { %v650_v39 = vrot.slane %v649_v12, 1 }
 0x227   : >> { %v2062_v43 = vmax.f32 %v612_v16, %v613_v8 }
 0x228   : >> { %v2064_v4 = vmax.f32 %v649_v12, %v650_v39 }
 0x229   : >> { %v652_v47 = vsub.f32 %v1870_v24, %v2062_v43  ;;  %v654_v55 = vsub.f32 %v1874_v26, %v2062_v43  ;;  %v656_v37 = vsub.f32 %v1878_v28, %v2062_v43  ;;  %v658_v45 = vsub.f32 %v1886_v32, %v2062_v43 }
 0x22a   : >> { %v660_v0 = vsub.f32 %v1894_v36, %v2062_v43  ;;  %v662_v8 = vsub.f32 %v1900_v40, %v2062_v43  ;;  %v664_v12 = vsub.f32 %v1906_v44, %v2062_v43  ;;  %v666_v24 = vsub.f32 %v1912_v48, %v2062_v43  ;;  %v2979_v44 = vld [vmem:[#allocation29_spill] sm:$0xff] }
 0x22b   : >> { %v668_v26 = vsub.f32 %v1918_v52, %v2062_v43  ;;  %v670_v28 = vsub.f32 %v1924_v56, %v2062_v43  ;;  %v672_v32 = vsub.f32 %v1930_v60, %v2062_v43  ;;  %v674_v36 = vsub.f32 %v1936_v2, %v2062_v43  ;;  %v2972_v60 = vld [vmem:[#allocation24_spill] sm:$0xff]  ;;  %v2975_v52 = vld [vmem:[#allocation26_spill] sm:$0xff] }
 0x22c   : >> { %v716_v53 = vmul.f32 1.442695, %v652_v47  ;;  %v720_v17 = vmul.f32 1.442695, %v654_v55  ;;  %v724_v29 = vmul.f32 1.442695, %v656_v37  ;;  %v2984_v2 = vsub.f32 %v1954_v14, %v2062_v43 }
 0x22d   : >> { %v728_v39 = vmul.f32 1.442695, %v658_v45  ;;  %v732_v63 = vmul.f32 1.442695, %v660_v0  ;;  %v736_v20 = vmul.f32 1.442695, %v662_v8  ;;  %v2987_v14 = vsub.f32 %v1972_v33, %v2062_v43 }
 0x22e   : >> { %1341 = vpow2.f32 %v716_v53  ;;  %v740_v9 = vmul.f32 1.442695, %v664_v12  ;;  %v744_v16 = vmul.f32 1.442695, %v666_v24  ;;  %v748_v0 = vmul.f32 1.442695, %v668_v26 }
 0x22f   : >> { %1343 = vpow2.f32 %v720_v17  ;;  %v2959_v26 = vld [vmem:[#allocation13_spill] sm:$0xff]  ;;  %v2960_v12 = vld [vmem:[#allocation14_spill] sm:$0xff]  ;;  %v2961_v24 = vld [vmem:[#allocation15_spill] sm:$0xff]  ;;  %v756_v47 = vmul.f32 1.442695, %v672_v32 }
 0x230   : >> { %1345 = vpow2.f32 %v724_v29  ;;  %v2963_v53 = vld [vmem:[#allocation16_spill] sm:$0xff]  ;;  %v2966_v8 = vld [vmem:[#allocation19_spill] sm:$0xff]  ;;  %v2970_v55 = vld [vmem:[#allocation22_spill] sm:$0xff]  ;;  %v772_v37 = vmul.f32 1.442695, %v2984_v2 }
 0x231   : >> { %1347 = vpow2.f32 %v728_v39  ;;  %v752_v39 = vmul.f32 1.442695, %v670_v28  ;;  %v2965_v28 = vld [vmem:[#allocation18_spill] sm:$0xff]  ;;  %v2967_v45 = vld [vmem:[#allocation20_spill] sm:$0xff]  ;;  %v2971_v17 = vld [vmem:[#allocation23_spill] sm:$0xff] }
 0x232   : >> { %1349 = vpow2.f32 %v732_v63  ;;  %v2964_v63 = vld [vmem:[#allocation17_spill] sm:$0xff]  ;;  %v2976_v32 = vld [vmem:[#allocation27_spill] sm:$0xff]  ;;  %v784_v2 = vmul.f32 1.442695, %v2987_v14 }
 0x233   : >> { %1351 = vpow2.f32 %v736_v20 }
 0x234   : >> { %1353 = vpow2.f32 %v740_v9 }
 0x235   : >> { %1355 = vpow2.f32 %v744_v16  ;;  %v2969_v16 = vld [vmem:[#allocation21_spill] sm:$0xff] }
 0x236   : >> { %1357 = vpow2.f32 %v748_v0 }
 0x237   : >> { %1359 = vpow2.f32 %v752_v39  ;;  %v2980_v39 = vld [vmem:[#allocation30_spill] sm:$0xff] }
 0x238   : >> { %v2142_v29 = vpop.eup %1341  ;;  %1361 = vpow2.f32 %v756_v47 }
 0x239   : >> { %2957 = vst [vmem:[#allocation34_spill] sm:$0xff] %v2142_v29  ;;  %v2150_v20 = vpop.eup %1343 }
 0x23a   : >> { %2958 = vst [vmem:[#allocation35_spill] sm:$0xff] %v2150_v20  ;;  %v844_v13 = vadd.f32 %v2150_v20, %v2142_v29  ;;  %v2164_v9 = vpop.eup %1345  ;;  %v2983_v29 = vsub.f32 %v1948_v10, %v2062_v43  ;;  %v2986_v10 = vsub.f32 %v1966_v22, %v2062_v43  ;;  %v2989_v22 = vsub.f32 %v1876_v27, %v2064_v4 }
 0x23b   : >> { %2962 = vst [vmem:[#allocation13_spill] sm:$0xff] %v2164_v9  ;;  %v2177_v56 = vpop.eup %1347 }
 0x23c   : >> { %v845_v31 = vadd.f32 %v2164_v9, %v844_v13  ;;  %2968 = vst [vmem:[#allocation14_spill] sm:$0xff] %v2177_v56  ;;  %v760_v13 = vmul.f32 1.442695, %v674_v36  ;;  %v2193_v40 = vpop.eup %1349  ;;  %v2981_v9 = vld [vmem:[#allocation31_spill] sm:$0xff]  ;;  %v2982_v36 = vld [vmem:[#allocation32_spill] sm:$0xff] }
 0x23d   : >> { %2974 = vst [vmem:[#allocation15_spill] sm:$0xff] %v2193_v40  ;;  %v2209_v0 = vpop.eup %1351  ;;  %v768_v20 = vmul.f32 1.442695, %v2983_v29  ;;  %v780_v29 = vmul.f32 1.442695, %v2986_v10 }
 0x23e   : >> { %v846_v21 = vadd.f32 %v2177_v56, %v845_v31  ;;  %v2978_v31 = vsub.f32 %v1942_v6, %v2062_v43  ;;  %1363 = vpow2.f32 %v760_v13 }
 0x240   : >> { %v764_v56 = vmul.f32 1.442695, %v2978_v31  ;;  %v847_v48 = vadd.f32 %v2193_v40, %v846_v21  ;;  %v2218_v31 = vpop.eup %1353 }
 0x241   : >> { %v2224_v40 = vpop.eup %1355 }
 0x242   : >> { %v848_v21 = vadd.f32 %v2209_v0, %v847_v48  ;;  %1365 = vpow2.f32 %v764_v56  ;;  %v2230_v59 = vpop.eup %1357  ;;  %v2985_v48 = vsub.f32 %v1960_v18, %v2062_v43 }
 0x243   : >> { %1367 = vpow2.f32 %v768_v20  ;;  %v2239_v56 = vpop.eup %1359  ;;  %v2988_v20 = vsub.f32 %v1872_v25, %v2064_v4  ;;  %v2991_v25 = vsub.f32 %v1882_v30, %v2064_v4 }
 0x244   : >> { %v849_v47 = vadd.f32 %v2218_v31, %v848_v21  ;;  %v776_v13 = vmul.f32 1.442695, %v2985_v48  ;;  %1369 = vpow2.f32 %v772_v37  ;;  %v2248_v48 = vpop.eup %1361  ;;  %v2990_v37 = vsub.f32 %v1978_v41, %v2062_v43 }
 0x245   : >> { %v718_v18 = vmul.f32 1.442695, %v2988_v20  ;;  %v2994_v41 = vsub.f32 %v1890_v34, %v2064_v4 }
 0x246   : >> { %v850_v6 = vadd.f32 %v2224_v40, %v849_v47  ;;  %1371 = vpow2.f32 %v776_v13  ;;  %v788_v10 = vmul.f32 1.442695, %v2990_v37  ;;  %v2992_v13 = vsub.f32 %v1984_v49, %v2062_v43 }
 0x247   : >> { %1373 = vpow2.f32 %v780_v29  ;;  %v2997_v49 = vsub.f32 %v1897_v38, %v2064_v4 }
 0x248   : >> { %v851_v21 = vadd.f32 %v2230_v59, %v850_v6  ;;  %v722_v6 = vmul.f32 1.442695, %v2989_v22  ;;  %v2257_v14 = vpop.eup %1363  ;;  %1375 = vpow2.f32 %v784_v2  ;;  %v792_v20 = vmul.f32 1.442695, %v2992_v13 }
 0x249   : >> { %1377 = vpow2.f32 %v718_v18  ;;  %v2995_v2 = vsub.f32 %v1990_v57, %v2062_v43  ;;  %v734_v18 = vmul.f32 1.442695, %v2997_v49  ;;  %v2999_v57 = vsub.f32 %v1903_v42, %v2064_v4 }
 0x24a   : >> { %v852_v47 = vadd.f32 %v2239_v56, %v851_v21  ;;  %v726_v21 = vmul.f32 1.442695, %v2991_v25  ;;  %1379 = vpow2.f32 %v722_v6  ;;  %v2998_v6 = vsub.f32 %v1996_v3, %v2062_v43 }
 0x24b   : >> { %1381 = vpow2.f32 %v788_v10  ;;  %v796_v30 = vmul.f32 1.442695, %v2995_v2  ;;  %v738_v25 = vmul.f32 1.442695, %v2999_v57  ;;  %v3001_v3 = vsub.f32 %v1909_v46, %v2064_v4 }
 0x24c   : >> { %v853_v33 = vadd.f32 %v2248_v48, %v852_v47  ;;  %v2266_v29 = vpop.eup %1365  ;;  %v730_v47 = vmul.f32 1.442695, %v2994_v41  ;;  %1383 = vpow2.f32 %v726_v21  ;;  %v800_v34 = vmul.f32 1.442695, %v2998_v6 }
 0x24d   : >> { %2993 = vst [vmem:[#allocation16_spill] sm:$0xff] %v2266_v29  ;;  %v2275_v37 = vpop.eup %1367  ;;  %1385 = vpow2.f32 %v792_v20  ;;  %v3000_v21 = vsub.f32 %v2002_v11, %v2062_v43  ;;  %v3002_v42 = vsub.f32 %v2008_v19, %v2062_v43  ;;  %v3004_v46 = vsub.f32 %v2014_v35, %v2062_v43 }
 0x24e   : >> { %v854_v27 = vadd.f32 %v2257_v14, %v853_v33  ;;  %2996 = vst [vmem:[#allocation17_spill] sm:$0xff] %v2275_v37  ;;  %v2284_v33 = vpop.eup %1369  ;;  %1387 = vpow2.f32 %v730_v47 }
 0x24f   : >> { %1389 = vpow2.f32 %v796_v30  ;;  %v804_v38 = vmul.f32 1.442695, %v3000_v21  ;;  %v808_v47 = vmul.f32 1.442695, %v3002_v42  ;;  %v3003_v30 = vsub.f32 %v1915_v50, %v2064_v4 }
 0x250   : >> { %v855_v22 = vadd.f32 %v2266_v29, %v854_v27  ;;  %v2293_v20 = vpop.eup %1371  ;;  %1391 = vpow2.f32 %v734_v18  ;;  %v742_v27 = vmul.f32 1.442695, %v3001_v3  ;;  %v812_v18 = vmul.f32 1.442695, %v3004_v46 }
 0x251   : >> { %v2298_v41 = vpop.eup %1373  ;;  %1393 = vpow2.f32 %v800_v34  ;;  %v3005_v34 = vsub.f32 %v1921_v54, %v2064_v4  ;;  %v3006_v50 = vsub.f32 %v2020_v51, %v2062_v43  ;;  %v3010_v46 = vsub.f32 %v2032_v1, %v2062_v43 }
 0x252   : >> { %v856_v10 = vadd.f32 %v2275_v37, %v855_v22  ;;  %v2304_v11 = vpop.eup %1375  ;;  %1395 = vpow2.f32 %v738_v25  ;;  %v746_v22 = vmul.f32 1.442695, %v3003_v30  ;;  %v3009_v30 = vsub.f32 %v1933_v62, %v2064_v4 }
 0x253   : >> { %v2309_v49 = vpop.eup %1377  ;;  %1397 = vpow2.f32 %v804_v38  ;;  %v816_v25 = vmul.f32 1.442695, %v3006_v50 }
 0x254   : >> { %v857_v13 = vadd.f32 %v2284_v33, %v856_v10  ;;  %v2315_v19 = vpop.eup %1379  ;;  %1399 = vpow2.f32 %v742_v27  ;;  %v750_v10 = vmul.f32 1.442695, %v3005_v34  ;;  %v3008_v27 = vsub.f32 %v2026_v5, %v2062_v43 }
 0x255   : >> { %v2320_v57 = vpop.eup %1381  ;;  %1401 = vpow2.f32 %v808_v47  ;;  %v881_v35 = vadd.f32 %v2315_v19, %v2309_v49 }
 0x256   : >> { %v858_v2 = vadd.f32 %v2293_v20, %v857_v13  ;;  %v2328_v38 = vpop.eup %1383  ;;  %1403 = vpow2.f32 %v746_v22  ;;  %v3007_v13 = vsub.f32 %v1927_v58, %v2064_v4  ;;  %v820_v51 = vmul.f32 1.442695, %v3008_v27 }
 0x257   : >> { %v2333_v3 = vpop.eup %1385  ;;  %1405 = vpow2.f32 %v812_v18  ;;  %v882_v47 = vadd.f32 %v2328_v38, %v881_v35  ;;  %v758_v22 = vmul.f32 1.442695, %v3009_v30  ;;  %v824_v18 = vmul.f32 1.442695, %v3010_v46 }
 0x258   : >> { %v859_v6 = vadd.f32 %v2298_v41, %v858_v2  ;;  %v754_v54 = vmul.f32 1.442695, %v3007_v13  ;;  %v2340_v2 = vpop.eup %1387  ;;  %1407 = vpow2.f32 %v750_v10  ;;  %v3011_v10 = vsub.f32 %v2959_v26, %v2064_v4 }
 0x259   : >> { %v2345_v58 = vpop.eup %1389  ;;  %1409 = vpow2.f32 %v816_v25  ;;  %v3012_v25 = vsub.f32 %v2038_v23, %v2062_v43 }
 0x25a   : >> { %v860_v21 = vadd.f32 %v2304_v11, %v859_v6  ;;  %v883_v6 = vadd.f32 %v2340_v2, %v882_v47  ;;  %v2352_v34 = vpop.eup %1391  ;;  %1411 = vpow2.f32 %v754_v54  ;;  %v762_v50 = vmul.f32 1.442695, %v3011_v10 }
 0x25b   : >> { %v2357_v62 = vpop.eup %1393  ;;  %1413 = vpow2.f32 %v820_v51  ;;  %v3013_v54 = vsub.f32 %v2960_v12, %v2064_v4  ;;  %v3014_v51 = vsub.f32 %v2044_v15, %v2062_v43 }
 0x25c   : >> { %v861_v42 = vadd.f32 %v2320_v57, %v860_v21  ;;  %v828_v21 = vmul.f32 1.442695, %v3012_v25  ;;  %v884_v35 = vadd.f32 %v2352_v34, %v883_v6  ;;  %v2364_v13 = vpop.eup %1395  ;;  %1415 = vpow2.f32 %v758_v22 }
 0x25d   : >> { %v766_v27 = vmul.f32 1.442695, %v3013_v54  ;;  %v2369_v26 = vpop.eup %1397  ;;  %1417 = vpow2.f32 %v824_v18  ;;  %v3015_v22 = vsub.f32 %v2961_v24, %v2064_v4  ;;  %v3016_v18 = vsub.f32 %v2050_v7, %v2062_v43 }
 0x25e   : >> { %v862_v5 = vadd.f32 %v2333_v3, %v861_v42  ;;  %v832_v42 = vmul.f32 1.442695, %v3014_v51  ;;  %v885_v47 = vadd.f32 %v2364_v13, %v884_v35  ;;  %v2376_v30 = vpop.eup %1399  ;;  %1419 = vpow2.f32 %v762_v50 }
 0x25f   : >> { %v770_v46 = vmul.f32 1.442695, %v3015_v22  ;;  %v2381_v12 = vpop.eup %1401  ;;  %1421 = vpow2.f32 %v828_v21  ;;  %v3017_v50 = vsub.f32 %v2963_v53, %v2064_v4  ;;  %v3018_v21 = vsub.f32 %v2056_v61, %v2062_v43  ;;  %v2409_v61 = vpop.f32.mrb[0].mxu0 }
 0x260   : >> { %v863_v1 = vadd.f32 %v2345_v58, %v862_v5  ;;  %v836_v5 = vmul.f32 1.442695, %v3016_v18  ;;  %v886_v6 = vadd.f32 %v2376_v30, %v885_v47  ;;  %v2388_v10 = vpop.eup %1403  ;;  %1423 = vpow2.f32 %v766_v27  ;;  %3020 = vst [vmem:[#allocation18_spill] sm:$0xff] %v2409_v61 }
 0x261   : >> { %v774_v25 = vmul.f32 1.442695, %v3017_v50  ;;  %v2393_v24 = vpop.eup %1405  ;;  %1425 = vpow2.f32 %v832_v42  ;;  %v3019_v27 = vsub.f32 %v2964_v63, %v2064_v4  ;;  %v3021_v47 = vsub.f32 %v2965_v28, %v2064_v4 }
 0x262   : >> { %v864_v23 = vadd.f32 %v2357_v62, %v863_v1  ;;  %v840_v1 = vmul.f32 1.442695, %v3018_v21  ;;  %v887_v35 = vadd.f32 %v2388_v10, %v886_v6  ;;  %v2400_v54 = vpop.eup %1407  ;;  %1427 = vpow2.f32 %v770_v46  ;;  %v284_v46 = vpop.f32.mrb[1].mxu0 }
 0x263   : >> { %v778_v51 = vmul.f32 1.442695, %v3019_v27  ;;  %v2405_v53 = vpop.eup %1409  ;;  %1429 = vpow2.f32 %v836_v5  ;;  %v782_v22 = vmul.f32 1.442695, %v3021_v47  ;;  %v3023_v50 = vsub.f32 %v2966_v8, %v2064_v4 }
 0x264   : >> { %v865_v15 = vadd.f32 %v2369_v26, %v864_v23  ;;  %v888_v23 = vadd.f32 %v2400_v54, %v887_v35  ;;  %v2411_v43 = vpop.eup %1411  ;;  %1431 = vpow2.f32 %v774_v25 }
 0x265   : >> { %v2416_v18 = vpop.eup %1413  ;;  %1433 = vpow2.f32 %v840_v1  ;;  %v786_v25 = vmul.f32 1.442695, %v3023_v50 }
 0x266   : >> { %v866_v7 = vadd.f32 %v2381_v12, %v865_v15  ;;  %v889_v5 = vadd.f32 %v2411_v43, %v888_v23  ;;  %v2420_v15 = vpop.f32.mrb[2].mxu0  ;;  %v2422_v6 = vpop.eup %1415  ;;  %1435 = vpow2.f32 %v778_v51  ;;  %v3024_v51 = vsub.f32 %v2967_v45, %v2064_v4 }
 0x267   : >> { %3022 = vst [vmem:[#allocation19_spill] sm:$0xff] %v2420_v15  ;;  %v288_v21 = vpop.f32.mrb[3].mxu0  ;;  %1437 = vpow2.f32 %v782_v22 }
 0x268   : >> { %v867_v42 = vadd.f32 %v2393_v24, %v866_v7  ;;  %v2429_v7 = vpop.eup %1417  ;;  %v890_v35 = vadd.f32 %v2422_v6, %v889_v5  ;;  %v302_v27 = vpack.c.bf16 %v288_v21, %v284_v46  ;;  %v790_v23 = vmul.f32 1.442695, %v3024_v51  ;;  %v2451_v21 = vpop.f32.mrb[4].mxu0 }
 0x269   : >> { %1439 = vpow2.f32 %v786_v25  ;;  %v3026_v46 = vsub.f32 %v2969_v16, %v2064_v4  ;;  %3027 = vst [vmem:[#allocation21_spill] sm:$0xff] %v2451_v21  ;;  %v2458_v25 = vpop.f32.mrb[5].mxu0 }
 0x26a   : >> { %v868_v63 = vadd.f32 %v2405_v53, %v867_v42  ;;  %v2433_v42 = vpop.eup %1419  ;;  %1048 = vmatprep.mubr.bf16.mxu0 %v302_v27  ;;  %1441 = vpow2.f32 %v790_v23  ;;  %3030 = vst [vmem:[#allocation23_spill] sm:$0xff] %v2458_v25  ;;  %v3032_v23 = vsub.f32 %v2971_v17, %v2064_v4  ;;  %v3034_v17 = vsub.f32 %v2972_v60, %v2064_v4 }
 0x26b   : >> { %v2438_v8 = vpop.eup %1421  ;;  %v891_v50 = vadd.f32 %v2433_v42, %v890_v35  ;;  %v3037_v60 = vsub.f32 %v2975_v52, %v2064_v4 }
 0x26c   : >> { %v869_v1 = vadd.f32 %v2416_v18, %v868_v63  ;;  %v2442_v28 = vpop.eup %1423  ;;  %v794_v63 = vmul.f32 1.442695, %v3026_v46  ;;  %v802_v61 = vmul.f32 1.442695, %v3032_v23 }
 0x26d   : >> { %3025 = vst [vmem:[#allocation20_spill] sm:$0xff] %v2442_v28  ;;  %v2447_v5 = vpop.eup %1425  ;;  %v892_v45 = vadd.f32 %v2442_v28, %v891_v50 }
 0x26e   : >> { %v870_v47 = vadd.f32 %v2429_v7, %v869_v1  ;;  %v2453_v51 = vpop.eup %1427  ;;  %v3029_v1 = vsub.f32 %v2970_v55, %v2064_v4  ;;  %1443 = vpow2.f32 %v794_v63  ;;  %v806_v63 = vmul.f32 1.442695, %v3034_v17 }
 0x26f   : >> { %3028 = vst [vmem:[#allocation22_spill] sm:$0xff] %v2453_v51  ;;  %v2460_v27 = vpop.eup %1429  ;;  %v893_v46 = vadd.f32 %v2453_v51, %v892_v45 }
 0x270   : >> { %v871_v22 = vadd.f32 %v2438_v8, %v870_v47  ;;  %v798_v35 = vmul.f32 1.442695, %v3029_v1  ;;  %v2464_v47 = vpop.f32.mrb[6].mxu0  ;;  %v2466_v50 = vpop.eup %1431 }
 0x271   : >> { %3031 = vst [vmem:[#allocation24_spill] sm:$0xff] %v2464_v47  ;;  %v2473_v1 = vpop.f32.mrb[7].mxu0  ;;  %v2475_v15 = vpop.eup %1433  ;;  %v894_v45 = vadd.f32 %v2466_v50, %v893_v46 }
 0x272   : >> { %v872_v16 = vadd.f32 %v2447_v5, %v871_v22  ;;  %3033 = vst [vmem:[#allocation26_spill] sm:$0xff] %v2473_v1  ;;  %v2481_v29 = vpop.eup %1435  ;;  %1445 = vpow2.f32 %v798_v35  ;;  %v814_v35 = vmul.f32 1.442695, %v3037_v60 }
 0x273   : >> { %v895_v55 = vadd.f32 %v2481_v29, %v894_v45  ;;  %v2488_v21 = vpop.eup %1437  ;;  %1447 = vpow2.f32 %v802_v61  ;;  %v3038_v61 = vsub.f32 %v2976_v32, %v2064_v4  ;;  %v3041_v32 = vsub.f32 %v2979_v44, %v2064_v4 }
 0x274   : >> { %v873_v22 = vadd.f32 %v2460_v27, %v872_v16  ;;  %v3035_v16 = vld [vmem:[#allocation25_spill] sm:$0xff]  ;;  %v2494_v25 = vpop.eup %1439  ;;  %1449 = vpow2.f32 %v806_v63  ;;  %v3039_v63 = vld [vmem:[#allocation28_spill] sm:$0xff] }
 0x275   : >> { %v3036_v46 = vsub.f32 %v3035_v16, %v2064_v4  ;;  %v896_v37 = vadd.f32 %v2488_v21, %v895_v55  ;;  %v2500_v17 = vpop.eup %1441  ;;  %v818_v16 = vmul.f32 1.442695, %v3038_v61  ;;  %v3040_v52 = vsub.f32 %v3039_v63, %v2064_v4 }
 0x276   : >> { %v874_v23 = vadd.f32 %v2475_v15, %v873_v22 }
 0x277   : >> { %v810_v47 = vmul.f32 1.442695, %v3036_v46  ;;  %v897_v45 = vadd.f32 %v2494_v25, %v896_v37  ;;  %v822_v60 = vmul.f32 1.442695, %v3040_v52 }
 0x278   : >> { %v875_v51 = vrot.slane %v874_v23, 4  ;;  %v2506_v1 = vpop.eup %1443 }
 0x279   : >> { %1451 = vpow2.f32 %v810_v47  ;;  %v898_v55 = vadd.f32 %v2500_v17, %v897_v45  ;;  %v826_v47 = vmul.f32 1.442695, %v3041_v32 }
 0x27a   : >> { %v876_v22 = vadd.f32 %v875_v51, %v874_v23  ;;  %1453 = vpow2.f32 %v814_v35  ;;  %v3042_v35 = vsub.f32 %v2980_v39, %v2064_v4 }
 0x27b   : >> { %v899_v37 = vadd.f32 %v2506_v1, %v898_v55  ;;  %1455 = vpow2.f32 %v818_v16 }
 0x27c   : >> { %v877_v46 = vrot.slane %v876_v22, 2  ;;  %v2512_v23 = vpop.eup %1445  ;;  %1457 = vpow2.f32 %v822_v60  ;;  %v830_v63 = vmul.f32 1.442695, %v3042_v35  ;;  %v3044_v60 = vsub.f32 %v2982_v36, %v2064_v4 }
 0x27d   : >> { %v900_v45 = vadd.f32 %v2512_v23, %v899_v37  ;;  %v2518_v28 = vpop.eup %1447  ;;  %1459 = vpow2.f32 %v826_v47 }
 0x27e   : >> { %v878_v51 = vadd.f32 %v877_v46, %v876_v22  ;;  %v3043_v22 = vsub.f32 %v2981_v9, %v2064_v4  ;;  %v2527_v55 = vpop.eup %1449  ;;  %1461 = vpow2.f32 %v830_v63  ;;  %v838_v39 = vmul.f32 1.442695, %v3044_v60 }
 0x27f   : >> { %v901_v16 = vadd.f32 %v2518_v28, %v900_v45  ;;  %v3045_v45 = vld [vmem:[#allocation33_spill] sm:$0xff] }
 0x280   : >> { %v879_v61 = vrot.slane %v878_v51, 1  ;;  %v834_v46 = vmul.f32 1.442695, %v3043_v22  ;;  %v3046_v35 = vsub.f32 %v3045_v45, %v2064_v4 }
 0x281   : >> { %v902_v52 = vadd.f32 %v2527_v55, %v901_v16 }
 0x282   : >> { %v880_v44 = vadd.f32 %v879_v61, %v878_v51  ;;  %1463 = vpow2.f32 %v834_v46  ;;  %v842_v51 = vmul.f32 1.442695, %v3046_v35 }
 0x283   : >> { %v2530_v37 = vpop.eup %1451 }
 0x284   : >> { %v903_v32 = vadd.f32 %v2530_v37, %v902_v52  ;;  %v2536_v9 = vpop.eup %1453  ;;  %1465 = vrcp.f32 %v880_v44 }
 0x285   : >> { %v2542_v61 = vpop.eup %1455  ;;  %1467 = vpow2.f32 %v838_v39 }
 0x286   : >> { %v904_v47 = vadd.f32 %v2536_v9, %v903_v32  ;;  %v2545_v22 = vpop.eup %1457  ;;  %1469 = vpow2.f32 %v842_v51 }
 0x287   : >> { %v2548_v46 = vpop.eup %1459 }
 0x288   : >> { %v905_v63 = vadd.f32 %v2542_v61, %v904_v47  ;;  %v2551_v44 = vpop.eup %1461 }
 0x28a   : >> { %v906_v36 = vadd.f32 %v2545_v22, %v905_v63 }
 0x28c   : >> { %v907_v16 = vadd.f32 %v2548_v46, %v906_v36  ;;  %v2553_v4 = vpop.eup %1463 }
 0x28e   : >> { %v908_v52 = vadd.f32 %v2551_v44, %v907_v16  ;;  %v2556_v60 = vpop.eup %1465 }
 0x28f   : >> { %v2559_v32 = vpop.eup %1467  ;;  %v2564_v35 = vmul.f32 %v2556_v60, %v2284_v33  ;;  %v2568_v51 = vmul.f32 %v2556_v60, %v2293_v20  ;;  %v2574_v63 = vmul.f32 %v2556_v60, %v2298_v41  ;;  %v2578_v36 = vmul.f32 %v2556_v60, %v2304_v11 }
 0x290   : >> { %v909_v39 = vadd.f32 %v2553_v4, %v908_v52  ;;  %v2570_v47 = vpop.eup %1469  ;;  %v2585_v52 = vmul.f32 %v2556_v60, %v2320_v57  ;;  %v2589_v20 = vmul.f32 %v2556_v60, %v2333_v3  ;;  %v2595_v11 = vmul.f32 %v2556_v60, %v2345_v58 }
 0x291   : >> { %v2609_v33 = vmul.f32 %v2556_v60, %v2381_v12  ;;  %v2613_v58 = vmul.f32 %v2556_v60, %v2393_v24  ;;  %v2619_v41 = vmul.f32 %v2556_v60, %v2405_v53  ;;  %v2627_v3 = vmul.f32 %v2556_v60, %v2429_v7 }
 0x292   : >> { %v910_v45 = vadd.f32 %v2559_v32, %v909_v39  ;;  %3047 = vst [vmem:[#allocation27_spill] sm:$0xff] %v2585_v52  ;;  %v2599_v39 = vmul.f32 %v2556_v60, %v2357_v62  ;;  %v2633_v52 = vmul.f32 %v2556_v60, %v2438_v8  ;;  %v2637_v53 = vmul.f32 %v2556_v60, %v2447_v5 }
 0x293   : >> { %3049 = vst [vmem:[#allocation30_spill] sm:$0xff] %v2609_v33  ;;  %3050 = vst [vmem:[#allocation31_spill] sm:$0xff] %v2613_v58  ;;  %v2645_v7 = vmul.f32 %v2556_v60, %v2460_v27  ;;  %v3057_v33 = vld [vmem:[#allocation14_spill] sm:$0xff] }
 0x294   : >> { %v911_v16 = vadd.f32 %v2570_v47, %v910_v45  ;;  %v2603_v45 = vmul.f32 %v2556_v60, %v2369_v26  ;;  %3051 = vst [vmem:[#allocation32_spill] sm:$0xff] %v2619_v41  ;;  %v2623_v26 = vmul.f32 %v2556_v60, %v2416_v18  ;;  %3053 = vst [vmem:[#allocation28_spill] sm:$0xff] %v2627_v3  ;;  %v3055_v3 = vld [vmem:[#allocation35_spill] sm:$0xff]  ;;  %v3056_v41 = vld [vmem:[#allocation13_spill] sm:$0xff] }
 0x296   : >> { %3048 = vst [vmem:[#allocation29_spill] sm:$0xff] %v2603_v45  ;;  %v912_v57 = vrot.slane %v911_v16, 4  ;;  %3052 = vst [vmem:[#allocation25_spill] sm:$0xff] %v2623_v26  ;;  %v3054_v26 = vld [vmem:[#allocation34_spill] sm:$0xff]  ;;  %v924_v45 = vmul.f32 %v2556_v60, %v3056_v41 }
 0x297   : >> { %v920_v27 = vmul.f32 %v2556_v60, %v3054_v26 }
 0x298   : >> { %v913_v12 = vadd.f32 %v912_v57, %v911_v16  ;;  %v2649_v16 = vmul.f32 %v2556_v60, %v2475_v15  ;;  %v922_v15 = vmul.f32 %v2556_v60, %v3055_v3  ;;  %v926_v57 = vmul.f32 %v2556_v60, %v3057_v33 }
 0x29a   : >> { %v914_v8 = vrot.slane %v913_v12, 2  ;;  %v984_v33 = vpack.c.bf16 %v922_v15, %v920_v27 }
 0x29c   : >> { %v915_v24 = vadd.f32 %v914_v8, %v913_v12  ;;  %v3058_v8 = vld [vmem:[#allocation15_spill] sm:$0xff] }
 0x29e   : >> { %v916_v18 = vrot.slane %v915_v24, 1 }
 0x2a0   : >> { %v917_v58 = vadd.f32 %v916_v18, %v915_v24 }
 0x2a2   : >> { %1471 = vrcp.f32 %v917_v58 }
 0x2ac   : >> { %v2655_v62 = vpop.eup %1471 }
 0x2ad   : >> { %v921_v12 = vmul.f32 %v2655_v62, %v2309_v49  ;;  %v923_v58 = vmul.f32 %v2655_v62, %v2315_v19  ;;  %v925_v24 = vmul.f32 %v2655_v62, %v2328_v38  ;;  %v927_v26 = vmul.f32 %v2655_v62, %v2340_v2 }
 0x2ae   : >> { %v929_v3 = vmul.f32 %v2655_v62, %v2352_v34  ;;  %v931_v41 = vmul.f32 %v2655_v62, %v2364_v13  ;;  %v928_v49 = vmul.f32 %v2556_v60, %v3058_v8  ;;  %v930_v19 = vmul.f32 %v2556_v60, %v2209_v0 }
 0x2af   : >> { %v985_v18 = vpack.c.bf16 %v923_v58, %v921_v12  ;;  %v932_v38 = vmul.f32 %v2556_v60, %v2218_v31  ;;  %v987_v5 = vpack.c.bf16 %v927_v26, %v925_v24  ;;  %v986_v2 = vpack.c.bf16 %v926_v57, %v924_v45 }
 0x2b0   : >> { %v933_v12 = vmul.f32 %v2655_v62, %v2376_v30  ;;  %v2687_v34 = vmul.f32 %v2655_v62, %v2466_v50  ;;  %v935_v13 = vmul.f32 %v2655_v62, %v2388_v10  ;;  %v951_v0 = vmul.f32 %v2655_v62, %v2481_v29 }
 0x2b1   : >> { %1016 = vmatprep.subr.bf16.mxu0 %v985_v18  ;;  %v953_v31 = vmul.f32 %v2655_v62, %v2488_v21  ;;  %v955_v45 = vmul.f32 %v2655_v62, %v2494_v25  ;;  %v989_v57 = vpack.c.bf16 %v931_v41, %v929_v3  ;;  %v957_v30 = vmul.f32 %v2655_v62, %v2500_v17 }
 0x2b2   : >> { %1017 = vmatpush1.bf16.msra.mxu0 %v984_v33  ;;  %v959_v50 = vmul.f32 %v2655_v62, %v2506_v1  ;;  %v961_v10 = vmul.f32 %v2655_v62, %v2512_v23  ;;  %v999_v27 = vpack.c.bf16 %v951_v0, %v2687_v34  ;;  %v963_v21 = vmul.f32 %v2655_v62, %v2518_v28  ;;  %v3062_v0 = vld [vmem:[#allocation17_spill] sm:$0xff] }
 0x2b3   : >> { %1018 = vmatprep.subr.bf16.mxu0 %v987_v5  ;;  %v1001_v29 = vpack.c.bf16 %v955_v45, %v953_v31  ;;  %v965_v25 = vmul.f32 %v2655_v62, %v2527_v55  ;;  %v967_v15 = vmul.f32 %v2655_v62, %v2530_v37  ;;  %v969_v17 = vmul.f32 %v2655_v62, %v2536_v9 }
 0x2b4   : >> { %v1003_v5 = vpack.c.bf16 %v959_v50, %v957_v30  ;;  %v971_v1 = vmul.f32 %v2655_v62, %v2542_v61  ;;  %v1005_v23 = vpack.c.bf16 %v963_v21, %v961_v10  ;;  %v973_v58 = vmul.f32 %v2655_v62, %v2545_v22  ;;  %v3079_v21 = vld [vmem:[#allocation19_spill] sm:$0xff] }
 0x2b5   : >> { %v975_v28 = vmul.f32 %v2655_v62, %v2548_v46  ;;  %v977_v55 = vmul.f32 %v2655_v62, %v2551_v44  ;;  %v1007_v24 = vpack.c.bf16 %v967_v15, %v965_v25  ;;  %v979_v9 = vmul.f32 %v2655_v62, %v2553_v4  ;;  %v3080_v25 = vld [vmem:[#allocation18_spill] sm:$0xff] }
 0x2b6   : >> { %1019 = vmatpush1.bf16.msra.mxu0 %v986_v2  ;;  %v1009_v37 = vpack.c.bf16 %v971_v1, %v969_v17  ;;  %v981_v61 = vmul.f32 %v2655_v62, %v2559_v32  ;;  %v988_v26 = vpack.c.bf16 %v930_v19, %v928_v49  ;;  %v934_v18 = vmul.f32 %v2556_v60, %v2224_v40  ;;  %v3059_v2 = vld [vmem:[#allocation20_spill] sm:$0xff]  ;;  %v3082_v15 = vld [vmem:[#allocation26_spill] sm:$0xff]  ;;  %v3083_v17 = vld [vmem:[#allocation23_spill] sm:$0xff] }
 0x2b7   : >> { %1020 = vmatprep.subr.bf16.mxu0 %v989_v57  ;;  %v1011_v22 = vpack.c.bf16 %v975_v28, %v973_v58  ;;  %v983_v46 = vmul.f32 %v2655_v62, %v2570_v47  ;;  %v991_v3 = vpack.c.bf16 %v935_v13, %v933_v12  ;;  %v937_v44 = vmul.f32 %v2655_v62, %v2400_v54  ;;  %v3060_v12 = vld [vmem:[#allocation22_spill] sm:$0xff]  ;;  %v3065_v57 = vld [vmem:[#allocation27_spill] sm:$0xff]  ;;  %v3086_v58 = vld [vmem:[#allocation21_spill] sm:$0xff] }
 0x2b8   : >> { %v939_v41 = vmul.f32 %v2655_v62, %v2411_v43  ;;  %v1013_v33 = vpack.c.bf16 %v979_v9, %v977_v55  ;;  %v990_v32 = vpack.c.bf16 %v934_v18, %v932_v38  ;;  %v936_v8 = vmul.f32 %v2556_v60, %v2230_v59 }
 0x2b9   : >> { %v1015_v4 = vpack.c.bf16 %v983_v46, %v981_v61  ;;  %v938_v40 = vmul.f32 %v2556_v60, %v2239_v56  ;;  %v941_v47 = vmul.f32 %v2655_v62, %v2422_v6  ;;  %v943_v54 = vmul.f32 %v2655_v62, %v2433_v42  ;;  %v3061_v42 = vld [vmem:[#allocation16_spill] sm:$0xff] }
 0x2ba   : >> { %1021 = vmatpush1.bf16.msra.mxu0 %v988_v26  ;;  %v993_v49 = vpack.c.bf16 %v939_v41, %v937_v44  ;;  %v940_v19 = vmul.f32 %v2556_v60, %v2248_v48  ;;  %v942_v38 = vmul.f32 %v2556_v60, %v2257_v14  ;;  %v945_v56 = vmul.f32 %v2655_v62, %v3059_v2 }
 0x2bb   : >> { %1022 = vmatprep.subr.bf16.mxu0 %v991_v3  ;;  %v992_v43 = vpack.c.bf16 %v938_v40, %v936_v8  ;;  %v995_v59 = vpack.c.bf16 %v943_v54, %v941_v47  ;;  %v947_v34 = vmul.f32 %v2655_v62, %v3060_v12  ;;  %v944_v13 = vmul.f32 %v2556_v60, %v3061_v42 }
 0x2bc   : >> { %v994_v6 = vpack.c.bf16 %v942_v38, %v940_v19  ;;  %v946_v31 = vmul.f32 %v2556_v60, %v3062_v0  ;;  %v3063_v45 = vpack.c.bf16 %v2568_v51, %v2564_v35  ;;  %v3064_v62 = vpack.c.bf16 %v2578_v36, %v2574_v63  ;;  %v3068_v35 = vld [vmem:[#allocation30_spill] sm:$0xff]  ;;  %v3069_v51 = vld [vmem:[#allocation29_spill] sm:$0xff]  ;;  %v3071_v63 = vld [vmem:[#allocation32_spill] sm:$0xff] }
 0x2bd   : >> { %v997_v48 = vpack.c.bf16 %v947_v34, %v945_v56  ;;  %v3066_v30 = vpack.c.bf16 %v2589_v20, %v3065_v57  ;;  %v3067_v60 = vpack.c.bf16 %v2599_v39, %v2595_v11  ;;  %v3070_v50 = vpack.c.bf16 %v3068_v35, %v3069_v51  ;;  %v3072_v36 = vld [vmem:[#allocation31_spill] sm:$0xff]  ;;  %v3074_v20 = vld [vmem:[#allocation28_spill] sm:$0xff] }
 0x2be   : >> { %1023 = vmatpush1.bf16.msra.mxu0 %v990_v32  ;;  %v996_v14 = vpack.c.bf16 %v946_v31, %v944_v13  ;;  %v3073_v10 = vpack.c.bf16 %v3071_v63, %v3072_v36  ;;  %v3077_v11 = vpack.c.bf16 %v2637_v53, %v2633_v52  ;;  %v3078_v39 = vpack.c.bf16 %v2649_v16, %v2645_v7 }
 0x2bf   : >> { %1024 = vmatprep.subr.bf16.mxu0 %v993_v49  ;;  %v3084_v1 = vpack.c.bf16 %v3082_v15, %v3083_v17 }
 0x2c2   : >> { %1025 = vmatpush1.bf16.msra.mxu0 %v992_v43 }
 0x2c3   : >> { %1026 = vmatprep.subr.bf16.mxu0 %v995_v59 }
 0x2c6   : >> { %1027 = vmatpush1.bf16.msra.mxu0 %v994_v6 }
 0x2c7   : >> { %1028 = vmatprep.subr.bf16.mxu0 %v997_v48 }
 0x2ca   : >> { %1029 = vmatpush1.bf16.msra.mxu0 %v996_v14 }
 0x2cb   : >> { %1030 = vmatprep.subr.bf16.mxu0 %v999_v27  ;;  %v3075_v27 = vld [vmem:[#allocation25_spill] sm:$0xff] }
 0x2ce   : >> { %1031 = vmatpush1.bf16.msra.mxu0 %v3063_v45 }
 0x2cf   : >> { %1032 = vmatprep.subr.bf16.mxu0 %v1001_v29  ;;  %v3076_v29 = vpack.c.bf16 %v3074_v20, %v3075_v27 }
 0x2d2   : >> { %1033 = vmatpush1.bf16.msra.mxu0 %v3064_v62 }
 0x2d3   : >> { %1034 = vmatprep.subr.bf16.mxu0 %v1003_v5  ;;  %v3081_v5 = vpack.c.bf16 %v3079_v21, %v3080_v25 }
 0x2d6   : >> { %1035 = vmatpush1.bf16.msra.mxu0 %v3066_v30 }
 0x2d7   : >> { %1036 = vmatprep.subr.bf16.mxu0 %v1005_v23  ;;  %v3085_v23 = vld [vmem:[#allocation24_spill] sm:$0xff] }
 0x2d8   : >> { %v3087_v28 = vpack.c.bf16 %v3085_v23, %v3086_v58 }
 0x2da   : >> { %1037 = vmatpush1.bf16.msra.mxu0 %v3067_v60 }
 0x2db   : >> { %1038 = vmatprep.subr.bf16.mxu0 %v1007_v24 }
 0x2de   : >> { %1039 = vmatpush1.bf16.msra.mxu0 %v3070_v50 }
 0x2df   : >> { %1040 = vmatprep.subr.bf16.mxu0 %v1009_v37 }
 0x2e2   : >> { %1041 = vmatpush1.bf16.msra.mxu0 %v3073_v10 }
 0x2e3   : >> { %1042 = vmatprep.subr.bf16.mxu0 %v1011_v22 }
 0x2e6   : >> { %1043 = vmatpush1.bf16.msra.mxu0 %v3076_v29 }
 0x2e7   : >> { %1044 = vmatprep.subr.bf16.mxu0 %v1013_v33 }
 0x2ea   : >> { %1045 = vmatpush1.bf16.msra.mxu0 %v3077_v11 }
 0x2eb   : >> { %1046 = vmatprep.subr.bf16.mxu0 %v1015_v4 }
 0x2ee   : >> { %1047 = vmatpush1.bf16.msra.mxu0 %v3078_v39 }
 0x2f1   : >> { %1049 = vmatmul.mubr.bf16.vlgmr.msra.gmra.mrb[8].mxu0 %v3081_v5 }
 0x2f2   : >> { %1058 = vmatprep.mubr.bf16.mxu0 %v3084_v1 }
 0x2f9   : >> { %1059 = vmatmul.mubr.bf16.gmra.mrb[12].mxu0 %v3087_v28 }
 0x3c4   : >> { %v1050_v52 = vpop.f32.mrb[8].mxu0 }
 0x3c5   : >> { %1072 = vst [vmem:[%s1071_s7] sm:$0xff] %v1050_v52  ;;  %v1052_v53 = vpop.f32.mrb[9].mxu0 }
 0x3c6   : >> { %1073 = vst [vmem:[%s1071_s7 + $0x8] sm:$0xff] %v1052_v53  ;;  %v1054_v7 = vpop.f32.mrb[10].mxu0 }
 0x3c7   : >> { %1074 = vst [vmem:[%s1071_s7 + $0x10] sm:$0xff] %v1054_v7  ;;  %v1056_v16 = vpop.f32.mrb[11].mxu0 }
 0x3c8   : >> { %1075 = vst [vmem:[%s1071_s7 + $0x18] sm:$0xff] %v1056_v16 }
 0x3ca   : > { %202 = sbr.rel (!%p200_p4) target bundleno = 97 (0x61), region = 86 }
 0x3cc   : >> { %v1060_v55 = vpop.f32.mrb[12].mxu0 }
 0x3cd   : >> { %1076 = vst [vmem:[%s1071_s7 + $0x20] sm:$0xff] %v1060_v55  ;;  %v1062_v24 = vpop.f32.mrb[13].mxu0 }
 0x3ce   : >> { %1077 = vst [vmem:[%s1071_s7 + $0x28] sm:$0xff] %v1062_v24  ;;  %v1064_v37 = vpop.f32.mrb[14].mxu0 }
 0x3cf   : >> { %1078 = vst [vmem:[%s1071_s7 + $0x30] sm:$0xff] %v1064_v37  ;;  %v1066_v9 = vpop.f32.mrb[15].mxu0 }
 0x3d0   : >> { %1079 = vst [vmem:[%s1071_s7 + $0x38] sm:$0xff] %v1066_v9 }
 0x3d1   : > { %1544 = shalt.err (!%p1541_p9)
}
 0x3d2   : > { %s1545_s24 = scalar_lea.hbm %s2797_s30, 2048  ;;  %s1549_s5 = scalar_lea.hbm %s2851_s2, 4096 }
 0x3d3   : > { %p1546_p1 = scmp.ne.s32.totalorder %s2797_s30, %s1545_s24  ;;  %p1550_p7 = scmp.lt.u32.totalorder %s2797_s30, %s2851_s2 }
 0x3d4   : > { %p1551_p13 = scmp.lt.u32.totalorder %s1549_s5, %s1545_s24  ;;  %p1553_p6 = scmp.lt.u32.totalorder %s1545_s24, %s2797_s30 }
 0x3d5   : > { %p1547_p2 = pnand %p1546_p1, %p1748_p10 }
 0x3d6   : > { %p1552_p4 = por %p1551_p13, %p1550_p7 }
 0x3d7   : > { %p1548_p3 = pneg %p1547_p2 }
 0x3d8   : > { %p1554_p8 = por %p1553_p6, %p1552_p4 }
 0x3da   : > { %p1555_p12 = pnand %p1554_p8, %p1548_p3 }
 0x3dc   : > { %1558 = shalt.err (!%p1555_p12)
}
 0x3dd   : > { %s1635_s6 = smov 256   ;;  %s1636_s7 = smov 16  }
 0x3de   : > { %1256 = dma.vmem_to_hbm [thread:$0]  (%p1748_p10), %s2800_s3, 2048, %s2797_s30, %s1081_s18, %s1635_s6, %s1635_s6, %s1636_s7  }
 0x3df PF: > { %s1112_s27 = sand.u32 1, %s1601_s9   ;;  %p3088_p11 = scmp.ne.s32.totalorder %s2922_s20, 0 }
 0x3e0   : > { %p3089_p0 = scmp.ge.s32.totalorder %s1621_s14, 2  ;;  %s1113_s23 = scalar_lea.sflag [#allocation4], %s1112_s27 }
 0x3e2   : > { %p1267_p5 = pnand %p3089_p0, %p3088_p11 }
 0x3e4   : > { %1596 = dma.done.wait (!%p1267_p5), %s1113_s23, 2048  }
 0x3e5   : > { %1598 = vsyncadd (!%p1267_p5), %s1113_s23, 4294965248  ;;  %s19_s14 = sadd.s32 1, %s1621_s14   ;;  %s3090_s9 = smov %s1605_s10 }
 0x3e6   : > { %p16_p9 = scmp.ge.s32.totalorder %s19_s14, 4   ;;  %s3091_s10 = smov %s1609_s11 }
 0x3e7   : > { %s3092_s11 = smov %s1757_s28  ;;  %s3093_s12 = smov %s1617_s13 }
 0x3e8   : > { %s3094_s13 = smov %s3096_s25  ;;  %18 = sbr.rel (!%p16_p9) target bundleno = 7 (0x7), region = 97 }
 0x3ef   :  { %1118 = vsyncpa [#allocation3], 1 }
 0x3f0   :  { %1120 = vsyncpa [#allocation3 + $0x1], 1 }
 0x3f1   :  { %1121 = vsyncpa [#allocation6], 1 }
 0x3f2   :  { %1122 = vsyncpa [#allocation4], 1 }
 0x3f3   :  { %1124 = vsyncpa [#allocation4 + $0x1], 1 }

</bundles_post_ra>
